<compile_context>
chip_gen: v7x
topology: tpu7x:2x2x1
jax: 0.10.0
libtpu: 0.0.40
codegen_flags: <defaults>
</compile_context>

<pallas_src>
import functools

import jax
import jax.numpy as jnp
import numpy as np
from jax.experimental import pallas as pl
from jax.experimental.pallas import tpu as pltpu

LN_EPS = 1e-5


def _layernorm(x, w, b):
    mu = jnp.mean(x, axis=-1, keepdims=True)
    var = jnp.mean((x - mu) ** 2, axis=-1, keepdims=True)
    return (x - mu) * jax.lax.rsqrt(var + LN_EPS) * w + b


def _gelu(x):
    # exact erf-based GELU (torch.nn.GELU default, approximate='none')
    return 0.5 * x * (1.0 + jax.lax.erf(x * 0.7071067811865476))


def _fused_mixer_kernel(num_layers, B, P, D,
                        x_ref,
                        ln1w_ref, ln1b_ref, w1t_ref, b1t_ref, w2t_ref, b2t_ref,
                        ln2w_ref, ln2b_ref, w1c_ref, b1c_ref, w2c_ref, b2c_ref,
                        wf_ref, bf_ref,
                        out_ref):
    # Fold batch into the sublane axis: (B*P, D). Sublane-aligned concat (P % 8 == 0).
    x2 = jnp.concatenate([x_ref[b] for b in range(B)], axis=0).astype(jnp.float32)

    # L is small here; a static unrolled loop is fine. For deep towers switch to
    # lax.fori_loop (dynamic ref[l] indexing) or an "arbitrary" layer grid axis.
    for l in range(num_layers):
        # ---- token mixing: PreNormResidual(FeedForward(patch_dim, ..., Conv1d k=1)) ----
        xn = _layernorm(x2, ln1w_ref[0, l], ln1b_ref[0, l])                   # (B*P, D)
        # fold batch into lanes: (P, B*D) -> one wide MXU matmul covers all B
        xt = jnp.concatenate([xn[b * P:(b + 1) * P, :] for b in range(B)], axis=1)
        h = jnp.dot(w1t_ref[0, l], xt, preferred_element_type=jnp.float32) + b1t_ref[0, l]
        h = _gelu(h)                                                          # (P//4, B*D)
        h = jnp.dot(w2t_ref[0, l], h, preferred_element_type=jnp.float32) + b2t_ref[0, l]
        # fold back to (B*P, D)
        h2 = jnp.concatenate([h[:, b * D:(b + 1) * D] for b in range(B)], axis=0)
        x2 = x2 + h2
        # ---- channel mixing: PreNormResidual(FeedForward(input_dim, ..., Linear)) ----
        xn = _layernorm(x2, ln2w_ref[0, l], ln2b_ref[0, l])                   # (B*P, D)
        h = jnp.dot(xn, w1c_ref[0, l], preferred_element_type=jnp.float32) + b1c_ref[0, l]
        h = _gelu(h)                                                          # (B*P, D//4)
        h = jnp.dot(h, w2c_ref[0, l], preferred_element_type=jnp.float32) + b2c_ref[0, l]
        x2 = x2 + h

    # final nn.Linear(input_dim, 1), computed lane-dense: (1, D) @ (D, B*P) -> (1, B*P)
    out_row = jnp.dot(wf_ref[0], x2.T, preferred_element_type=jnp.float32) + bf_ref[0]
    out_ref[0] = out_row


def mlp_mixer_forward(x, tl_params, br_params, num_layers):
    """Runs both towers in one pallas_call; returns (tl_score, br_score), each (B, P)."""
    B, P, D = x.shape
    # Stack the two towers along a leading axis; grid=(2,) picks one per step.
    params = tuple(jnp.stack([a, b]) for a, b in zip(tl_params, br_params))

    kernel = functools.partial(_fused_mixer_kernel, num_layers, B, P, D)

    def tower_spec(arr):
        nd = arr.ndim
        return pl.BlockSpec((1,) + arr.shape[1:],
                            lambda t, _nd=nd: (t,) + (0,) * (_nd - 1))

    in_specs = [pl.BlockSpec((B, P, D), lambda t: (0, 0, 0))]   # x shared by both towers
    in_specs += [tower_spec(p) for p in params]

    out = pl.pallas_call(
        kernel,
        out_shape=jax.ShapeDtypeStruct((2, 1, B * P), jnp.float32),
        grid=(2,),
        in_specs=in_specs,
        out_specs=pl.BlockSpec((1, 1, B * P), lambda t: (t, 0, 0)),
        compiler_params=pltpu.CompilerParams(dimension_semantics=("parallel",)),
    )(x, *params)

    out = out.reshape(2, B, P)   # free metadata reshape (contiguous), no kernel squeeze
    return out[0], out[1]


def init_tower_params(key, P, D, L):
    """Deterministic synthetic parameters matching the PyTorch module's shapes.

    Weights are pre-transposed / pre-reshaped for direct in-kernel use:
      token mix : W1t (L,P//4,P)+b1t (L,P//4,1), W2t (L,P,P//4)+b2t (L,P,1)
      chan  mix : W1c (L,D,D//4)+b1c (L,1,D//4), W2c (L,D//4,D)+b2c (L,1,D)
      layernorms: (L,1,D); final Linear: Wf (1,D) row, bf (1,1)
    """
    ks = jax.random.split(key, 14)
    r = lambda k, s: 0.05 * jax.random.normal(k, s, dtype=jnp.float32)
    ln1w = 1.0 + r(ks[0], (L, 1, D))
    ln1b = r(ks[1], (L, 1, D))
    w1t = r(ks[2], (L, P // 4, P))
    b1t = r(ks[3], (L, P // 4, 1))
    w2t = r(ks[4], (L, P, P // 4))
    b2t = r(ks[5], (L, P, 1))
    ln2w = 1.0 + r(ks[6], (L, 1, D))
    ln2b = r(ks[7], (L, 1, D))
    w1c = r(ks[8], (L, D, D // 4))
    b1c = r(ks[9], (L, 1, D // 4))
    w2c = r(ks[10], (L, D // 4, D))
    b2c = r(ks[11], (L, 1, D))
    wf = r(ks[12], (1, D))
    bf = r(ks[13], (1, 1))
    return (ln1w, ln1b, w1t, b1t, w2t, b2t,
            ln2w, ln2b, w1c, b1c, w2c, b2c, wf, bf)


def ref_tower(x, params, L):
    """Pure-JAX reference matching the PyTorch semantics (for verification)."""
    (ln1w, ln1b, w1t, b1t, w2t, b2t, ln2w, ln2b, w1c, b1c, w2c, b2c, wf, bf) = params

    def ln(v, w, b):
        mu = v.mean(-1, keepdims=True)
        var = ((v - mu) ** 2).mean(-1, keepdims=True)
        return (v - mu) / jnp.sqrt(var + LN_EPS) * w + b

    for l in range(L):
        xn = ln(x, ln1w[l], ln1b[l])
        h = jnp.einsum('qp,bpd->bqd', w1t[l], xn) + b1t[l]
        h = jax.nn.gelu(h, approximate=False)
        h = jnp.einsum('pq,bqd->bpd', w2t[l], h) + b2t[l]
        x = x + h
        xn = ln(x, ln2w[l], ln2b[l])
        h = xn @ w1c[l] + b1c[l]
        h = jax.nn.gelu(h, approximate=False)
        h = h @ w2c[l] + b2c[l]
        x = x + h
    return jnp.einsum('bpd,d->bp', x, wf[0]) + bf[0, 0]


if __name__ == "__main__":
    B, P, D, L = 2, 16, 32, 2      # batch, patch_dim, input_dim, num_layers
    HIDDEN = 64                    # hidden_dim (unused by FeedForward, kept for fidelity)

    key = jax.random.PRNGKey(0)
    k_x, k_tl, k_br = jax.random.split(key, 3)
    x = jax.random.normal(k_x, (B, P, D), dtype=jnp.float32)
    tl_params = init_tower_params(k_tl, P, D, L)
    br_params = init_tower_params(k_br, P, D, L)

    tl_score, br_score = mlp_mixer_forward(x, tl_params, br_params, L)
    jax.block_until_ready((tl_score, br_score))

    # sanity check against pure-JAX reference
    tl_ref = ref_tower(x, tl_params, L)
    br_ref = ref_tower(x, br_params, L)
    np.testing.assert_allclose(np.asarray(tl_score), np.asarray(tl_ref), rtol=1e-4, atol=1e-4)
    np.testing.assert_allclose(np.asarray(br_score), np.asarray(br_ref), rtol=1e-4, atol=1e-4)
    assert tl_score.shape == (B, P) and br_score.shape == (B, P)

    print("KERNEL_OK")
</pallas_src>

<mosaic_0001>
module attributes {stable_mosaic.version = 11 : i64} {
  func.func @_fused_mixer_kernel(%arg0: i32, %arg1: memref<2x16x32xf32, #tpu.memory_space<vmem>>, %arg2: memref<1x2x1x32xf32, #tpu.memory_space<vmem>>, %arg3: memref<1x2x1x32xf32, #tpu.memory_space<vmem>>, %arg4: memref<1x2x4x16xf32, #tpu.memory_space<vmem>>, %arg5: memref<1x2x4x1xf32, #tpu.memory_space<vmem>>, %arg6: memref<1x2x16x4xf32, #tpu.memory_space<vmem>>, %arg7: memref<1x2x16x1xf32, #tpu.memory_space<vmem>>, %arg8: memref<1x2x1x32xf32, #tpu.memory_space<vmem>>, %arg9: memref<1x2x1x32xf32, #tpu.memory_space<vmem>>, %arg10: memref<1x2x32x8xf32, #tpu.memory_space<vmem>>, %arg11: memref<1x2x1x8xf32, #tpu.memory_space<vmem>>, %arg12: memref<1x2x8x32xf32, #tpu.memory_space<vmem>>, %arg13: memref<1x2x1x32xf32, #tpu.memory_space<vmem>>, %arg14: memref<1x1x32xf32, #tpu.memory_space<vmem>>, %arg15: memref<1x1x1xf32, #tpu.memory_space<vmem>>, %arg16: memref<1x1x32xf32, #tpu.memory_space<vmem>>) attributes {dimension_semantics = [#tpu.dimension_semantics<parallel>], iteration_bounds = array<i64: 2>, scalar_prefetch = 0 : i64, scratch_operands = 0 : i64, tpu.core_type = #tpu.core_type<tc>, window_params = [{pipeline_mode = #tpu.pipeline_mode<synchronous>, transform_indices = @transform_0, window_bounds = array<i64: 2, 16, 32>}, {transform_indices = @transform_1, window_bounds = array<i64: 1, 2, 1, 32>}, {transform_indices = @transform_2, window_bounds = array<i64: 1, 2, 1, 32>}, {transform_indices = @transform_3, window_bounds = array<i64: 1, 2, 4, 16>}, {transform_indices = @transform_4, window_bounds = array<i64: 1, 2, 4, 1>}, {transform_indices = @transform_5, window_bounds = array<i64: 1, 2, 16, 4>}, {transform_indices = @transform_6, window_bounds = array<i64: 1, 2, 16, 1>}, {transform_indices = @transform_7, window_bounds = array<i64: 1, 2, 1, 32>}, {transform_indices = @transform_8, window_bounds = array<i64: 1, 2, 1, 32>}, {transform_indices = @transform_9, window_bounds = array<i64: 1, 2, 32, 8>}, {transform_indices = @transform_10, window_bounds = array<i64: 1, 2, 1, 8>}, {transform_indices = @transform_11, window_bounds = array<i64: 1, 2, 8, 32>}, {transform_indices = @transform_12, window_bounds = array<i64: 1, 2, 1, 32>}, {transform_indices = @transform_13, window_bounds = array<i64: 1, 1, 32>}, {transform_indices = @transform_14, window_bounds = array<i64: 1, 1, 1>}, {transform_indices = @transform_15, window_bounds = array<i64: 1, 1, 32>}]} {
    %c0 = arith.constant 0 : index
    %c0_0 = arith.constant 0 : index
    %c0_1 = arith.constant 0 : index
    %0 = vector.load %arg1[%c0, %c0_0, %c0_1] : memref<2x16x32xf32, #tpu.memory_space<vmem>>, vector<1x16x32xf32>
    %1 = vector.shape_cast %0 : vector<1x16x32xf32> to vector<16x32xf32>
    %c1 = arith.constant 1 : index
    %c0_2 = arith.constant 0 : index
    %c0_3 = arith.constant 0 : index
    %2 = vector.load %arg1[%c1, %c0_2, %c0_3] : memref<2x16x32xf32, #tpu.memory_space<vmem>>, vector<1x16x32xf32>
    %3 = vector.shape_cast %2 : vector<1x16x32xf32> to vector<16x32xf32>
    %4 = tpu.concatenate %1, %3 in 0 : vector<16x32xf32>, vector<16x32xf32> -> vector<32x32xf32>
    %c0_4 = arith.constant 0 : index
    %c0_5 = arith.constant 0 : index
    %c0_6 = arith.constant 0 : index
    %c0_7 = arith.constant 0 : index
    %5 = vector.load %arg2[%c0_4, %c0_5, %c0_6, %c0_7] : memref<1x2x1x32xf32, #tpu.memory_space<vmem>>, vector<1x1x1x32xf32>
    %6 = vector.shape_cast %5 : vector<1x1x1x32xf32> to vector<1x32xf32>
    %c0_8 = arith.constant 0 : index
    %c0_9 = arith.constant 0 : index
    %c0_10 = arith.constant 0 : index
    %c0_11 = arith.constant 0 : index
    %7 = vector.load %arg3[%c0_8, %c0_9, %c0_10, %c0_11] : memref<1x2x1x32xf32, #tpu.memory_space<vmem>>, vector<1x1x1x32xf32>
    %8 = vector.shape_cast %7 : vector<1x1x1x32xf32> to vector<1x32xf32>
    %cst = arith.constant dense<0.000000e+00> : vector<32xf32>
    %9 = vector.multi_reduction <add>, %4, %cst [1] : vector<32x32xf32> to vector<32xf32>
    %10 = vector.shape_cast %9 : vector<32xf32> to vector<32x1xf32>
    %cst_12 = arith.constant 3.200000e+01 : f32
    %11 = vector.broadcast %cst_12 : f32 to vector<32x1xf32>
    %12 = arith.divf %10, %11 : vector<32x1xf32>
    %13 = vector.broadcast %12 : vector<32x1xf32> to vector<32x32xf32>
    %14 = arith.subf %4, %13 : vector<32x32xf32>
    %15 = arith.mulf %14, %14 : vector<32x32xf32>
    %cst_13 = arith.constant dense<0.000000e+00> : vector<32xf32>
    %16 = vector.multi_reduction <add>, %15, %cst_13 [1] : vector<32x32xf32> to vector<32xf32>
    %17 = vector.shape_cast %16 : vector<32xf32> to vector<32x1xf32>
    %cst_14 = arith.constant 3.200000e+01 : f32
    %18 = vector.broadcast %cst_14 : f32 to vector<32x1xf32>
    %19 = arith.divf %17, %18 : vector<32x1xf32>
    %20 = vector.broadcast %12 : vector<32x1xf32> to vector<32x32xf32>
    %21 = arith.subf %4, %20 : vector<32x32xf32>
    %cst_15 = arith.constant 9.99999974E-6 : f32
    %22 = vector.broadcast %cst_15 : f32 to vector<32x1xf32>
    %23 = arith.addf %19, %22 : vector<32x1xf32>
    %24 = math.rsqrt %23 : vector<32x1xf32>
    %25 = vector.broadcast %24 : vector<32x1xf32> to vector<32x32xf32>
    %26 = arith.mulf %21, %25 : vector<32x32xf32>
    %27 = vector.broadcast %6 : vector<1x32xf32> to vector<32x32xf32>
    %28 = arith.mulf %26, %27 : vector<32x32xf32>
    %29 = vector.broadcast %8 : vector<1x32xf32> to vector<32x32xf32>
    %30 = arith.addf %28, %29 : vector<32x32xf32>
    %31 = vector.extract_strided_slice %30 {offsets = [0, 0], sizes = [16, 32], strides = [1, 1]} : vector<32x32xf32> to vector<16x32xf32>
    %32 = vector.extract_strided_slice %30 {offsets = [16, 0], sizes = [16, 32], strides = [1, 1]} : vector<32x32xf32> to vector<16x32xf32>
    %33 = tpu.concatenate %31, %32 in 1 : vector<16x32xf32>, vector<16x32xf32> -> vector<16x64xf32>
    %c0_16 = arith.constant 0 : index
    %c0_17 = arith.constant 0 : index
    %c0_18 = arith.constant 0 : index
    %c0_19 = arith.constant 0 : index
    %34 = vector.load %arg4[%c0_16, %c0_17, %c0_18, %c0_19] : memref<1x2x4x16xf32, #tpu.memory_space<vmem>>, vector<1x1x4x16xf32>
    %35 = vector.shape_cast %34 : vector<1x1x4x16xf32> to vector<4x16xf32>
    %cst_20 = arith.constant dense<0.000000e+00> : vector<4x64xf32>
    %36 = tpu.matmul %35, %33, %cst_20 {dimension_numbers = #tpu.dot_dimension_numbers<[1], [0], [0], [1], [0, 0, 1, 1], [], []>} : vector<4x16xf32>, vector<16x64xf32>, vector<4x64xf32> -> vector<4x64xf32>
    %c0_21 = arith.constant 0 : index
    %c0_22 = arith.constant 0 : index
    %c0_23 = arith.constant 0 : index
    %c0_24 = arith.constant 0 : index
    %37 = vector.load %arg5[%c0_21, %c0_22, %c0_23, %c0_24] : memref<1x2x4x1xf32, #tpu.memory_space<vmem>>, vector<1x1x4x1xf32>
    %38 = vector.shape_cast %37 : vector<1x1x4x1xf32> to vector<4x1xf32>
    %39 = vector.broadcast %38 : vector<4x1xf32> to vector<4x64xf32>
    %40 = arith.addf %36, %39 : vector<4x64xf32>
    %cst_25 = arith.constant 5.000000e-01 : f32
    %41 = vector.broadcast %cst_25 : f32 to vector<4x64xf32>
    %42 = arith.mulf %41, %40 : vector<4x64xf32>
    %cst_26 = arith.constant 0.707106769 : f32
    %43 = vector.broadcast %cst_26 : f32 to vector<4x64xf32>
    %44 = arith.mulf %40, %43 : vector<4x64xf32>
    %45 = math.erf %44 : vector<4x64xf32>
    %cst_27 = arith.constant 1.000000e+00 : f32
    %46 = vector.broadcast %cst_27 : f32 to vector<4x64xf32>
    %47 = arith.addf %46, %45 : vector<4x64xf32>
    %48 = arith.mulf %42, %47 : vector<4x64xf32>
    %c0_28 = arith.constant 0 : index
    %c0_29 = arith.constant 0 : index
    %c0_30 = arith.constant 0 : index
    %c0_31 = arith.constant 0 : index
    %49 = vector.load %arg6[%c0_28, %c0_29, %c0_30, %c0_31] : memref<1x2x16x4xf32, #tpu.memory_space<vmem>>, vector<1x1x16x4xf32>
    %50 = vector.shape_cast %49 : vector<1x1x16x4xf32> to vector<16x4xf32>
    %cst_32 = arith.constant dense<0.000000e+00> : vector<16x64xf32>
    %51 = tpu.matmul %50, %48, %cst_32 {dimension_numbers = #tpu.dot_dimension_numbers<[1], [0], [0], [1], [0, 0, 1, 1], [], []>} : vector<16x4xf32>, vector<4x64xf32>, vector<16x64xf32> -> vector<16x64xf32>
    %c0_33 = arith.constant 0 : index
    %c0_34 = arith.constant 0 : index
    %c0_35 = arith.constant 0 : index
    %c0_36 = arith.constant 0 : index
    %52 = vector.load %arg7[%c0_33, %c0_34, %c0_35, %c0_36] : memref<1x2x16x1xf32, #tpu.memory_space<vmem>>, vector<1x1x16x1xf32>
    %53 = vector.shape_cast %52 : vector<1x1x16x1xf32> to vector<16x1xf32>
    %54 = vector.broadcast %53 : vector<16x1xf32> to vector<16x64xf32>
    %55 = arith.addf %51, %54 : vector<16x64xf32>
    %56 = vector.extract_strided_slice %55 {offsets = [0, 0], sizes = [16, 32], strides = [1, 1]} : vector<16x64xf32> to vector<16x32xf32>
    %57 = vector.extract_strided_slice %55 {offsets = [0, 32], sizes = [16, 32], strides = [1, 1]} : vector<16x64xf32> to vector<16x32xf32>
    %58 = tpu.concatenate %56, %57 in 0 : vector<16x32xf32>, vector<16x32xf32> -> vector<32x32xf32>
    %59 = arith.addf %4, %58 : vector<32x32xf32>
    %c0_37 = arith.constant 0 : index
    %c0_38 = arith.constant 0 : index
    %c0_39 = arith.constant 0 : index
    %c0_40 = arith.constant 0 : index
    %60 = vector.load %arg8[%c0_37, %c0_38, %c0_39, %c0_40] : memref<1x2x1x32xf32, #tpu.memory_space<vmem>>, vector<1x1x1x32xf32>
    %61 = vector.shape_cast %60 : vector<1x1x1x32xf32> to vector<1x32xf32>
    %c0_41 = arith.constant 0 : index
    %c0_42 = arith.constant 0 : index
    %c0_43 = arith.constant 0 : index
    %c0_44 = arith.constant 0 : index
    %62 = vector.load %arg9[%c0_41, %c0_42, %c0_43, %c0_44] : memref<1x2x1x32xf32, #tpu.memory_space<vmem>>, vector<1x1x1x32xf32>
    %63 = vector.shape_cast %62 : vector<1x1x1x32xf32> to vector<1x32xf32>
    %cst_45 = arith.constant dense<0.000000e+00> : vector<32xf32>
    %64 = vector.multi_reduction <add>, %59, %cst_45 [1] : vector<32x32xf32> to vector<32xf32>
    %65 = vector.shape_cast %64 : vector<32xf32> to vector<32x1xf32>
    %cst_46 = arith.constant 3.200000e+01 : f32
    %66 = vector.broadcast %cst_46 : f32 to vector<32x1xf32>
    %67 = arith.divf %65, %66 : vector<32x1xf32>
    %68 = vector.broadcast %67 : vector<32x1xf32> to vector<32x32xf32>
    %69 = arith.subf %59, %68 : vector<32x32xf32>
    %70 = arith.mulf %69, %69 : vector<32x32xf32>
    %cst_47 = arith.constant dense<0.000000e+00> : vector<32xf32>
    %71 = vector.multi_reduction <add>, %70, %cst_47 [1] : vector<32x32xf32> to vector<32xf32>
    %72 = vector.shape_cast %71 : vector<32xf32> to vector<32x1xf32>
    %cst_48 = arith.constant 3.200000e+01 : f32
    %73 = vector.broadcast %cst_48 : f32 to vector<32x1xf32>
    %74 = arith.divf %72, %73 : vector<32x1xf32>
    %75 = vector.broadcast %67 : vector<32x1xf32> to vector<32x32xf32>
    %76 = arith.subf %59, %75 : vector<32x32xf32>
    %cst_49 = arith.constant 9.99999974E-6 : f32
    %77 = vector.broadcast %cst_49 : f32 to vector<32x1xf32>
    %78 = arith.addf %74, %77 : vector<32x1xf32>
    %79 = math.rsqrt %78 : vector<32x1xf32>
    %80 = vector.broadcast %79 : vector<32x1xf32> to vector<32x32xf32>
    %81 = arith.mulf %76, %80 : vector<32x32xf32>
    %82 = vector.broadcast %61 : vector<1x32xf32> to vector<32x32xf32>
    %83 = arith.mulf %81, %82 : vector<32x32xf32>
    %84 = vector.broadcast %63 : vector<1x32xf32> to vector<32x32xf32>
    %85 = arith.addf %83, %84 : vector<32x32xf32>
    %c0_50 = arith.constant 0 : index
    %c0_51 = arith.constant 0 : index
    %c0_52 = arith.constant 0 : index
    %c0_53 = arith.constant 0 : index
    %86 = vector.load %arg10[%c0_50, %c0_51, %c0_52, %c0_53] : memref<1x2x32x8xf32, #tpu.memory_space<vmem>>, vector<1x1x32x8xf32>
    %87 = vector.shape_cast %86 : vector<1x1x32x8xf32> to vector<32x8xf32>
    %cst_54 = arith.constant dense<0.000000e+00> : vector<32x8xf32>
    %88 = tpu.matmul %85, %87, %cst_54 {dimension_numbers = #tpu.dot_dimension_numbers<[1], [0], [0], [1], [0, 0, 1, 1], [], []>} : vector<32x32xf32>, vector<32x8xf32>, vector<32x8xf32> -> vector<32x8xf32>
    %c0_55 = arith.constant 0 : index
    %c0_56 = arith.constant 0 : index
    %c0_57 = arith.constant 0 : index
    %c0_58 = arith.constant 0 : index
    %89 = vector.load %arg11[%c0_55, %c0_56, %c0_57, %c0_58] : memref<1x2x1x8xf32, #tpu.memory_space<vmem>>, vector<1x1x1x8xf32>
    %90 = vector.shape_cast %89 : vector<1x1x1x8xf32> to vector<1x8xf32>
    %91 = vector.broadcast %90 : vector<1x8xf32> to vector<32x8xf32>
    %92 = arith.addf %88, %91 : vector<32x8xf32>
    %cst_59 = arith.constant 5.000000e-01 : f32
    %93 = vector.broadcast %cst_59 : f32 to vector<32x8xf32>
    %94 = arith.mulf %93, %92 : vector<32x8xf32>
    %cst_60 = arith.constant 0.707106769 : f32
    %95 = vector.broadcast %cst_60 : f32 to vector<32x8xf32>
    %96 = arith.mulf %92, %95 : vector<32x8xf32>
    %97 = math.erf %96 : vector<32x8xf32>
    %cst_61 = arith.constant 1.000000e+00 : f32
    %98 = vector.broadcast %cst_61 : f32 to vector<32x8xf32>
    %99 = arith.addf %98, %97 : vector<32x8xf32>
    %100 = arith.mulf %94, %99 : vector<32x8xf32>
    %c0_62 = arith.constant 0 : index
    %c0_63 = arith.constant 0 : index
    %c0_64 = arith.constant 0 : index
    %c0_65 = arith.constant 0 : index
    %101 = vector.load %arg12[%c0_62, %c0_63, %c0_64, %c0_65] : memref<1x2x8x32xf32, #tpu.memory_space<vmem>>, vector<1x1x8x32xf32>
    %102 = vector.shape_cast %101 : vector<1x1x8x32xf32> to vector<8x32xf32>
    %cst_66 = arith.constant dense<0.000000e+00> : vector<32x32xf32>
    %103 = tpu.matmul %100, %102, %cst_66 {dimension_numbers = #tpu.dot_dimension_numbers<[1], [0], [0], [1], [0, 0, 1, 1], [], []>} : vector<32x8xf32>, vector<8x32xf32>, vector<32x32xf32> -> vector<32x32xf32>
    %c0_67 = arith.constant 0 : index
    %c0_68 = arith.constant 0 : index
    %c0_69 = arith.constant 0 : index
    %c0_70 = arith.constant 0 : index
    %104 = vector.load %arg13[%c0_67, %c0_68, %c0_69, %c0_70] : memref<1x2x1x32xf32, #tpu.memory_space<vmem>>, vector<1x1x1x32xf32>
    %105 = vector.shape_cast %104 : vector<1x1x1x32xf32> to vector<1x32xf32>
    %106 = vector.broadcast %105 : vector<1x32xf32> to vector<32x32xf32>
    %107 = arith.addf %103, %106 : vector<32x32xf32>
    %108 = arith.addf %59, %107 : vector<32x32xf32>
    %c0_71 = arith.constant 0 : index
    %c1_72 = arith.constant 1 : index
    %c0_73 = arith.constant 0 : index
    %c0_74 = arith.constant 0 : index
    %109 = vector.load %arg2[%c0_71, %c1_72, %c0_73, %c0_74] : memref<1x2x1x32xf32, #tpu.memory_space<vmem>>, vector<1x1x1x32xf32>
    %110 = vector.shape_cast %109 : vector<1x1x1x32xf32> to vector<1x32xf32>
    %c0_75 = arith.constant 0 : index
    %c1_76 = arith.constant 1 : index
    %c0_77 = arith.constant 0 : index
    %c0_78 = arith.constant 0 : index
    %111 = vector.load %arg3[%c0_75, %c1_76, %c0_77, %c0_78] : memref<1x2x1x32xf32, #tpu.memory_space<vmem>>, vector<1x1x1x32xf32>
    %112 = vector.shape_cast %111 : vector<1x1x1x32xf32> to vector<1x32xf32>
    %cst_79 = arith.constant dense<0.000000e+00> : vector<32xf32>
    %113 = vector.multi_reduction <add>, %108, %cst_79 [1] : vector<32x32xf32> to vector<32xf32>
    %114 = vector.shape_cast %113 : vector<32xf32> to vector<32x1xf32>
    %cst_80 = arith.constant 3.200000e+01 : f32
    %115 = vector.broadcast %cst_80 : f32 to vector<32x1xf32>
    %116 = arith.divf %114, %115 : vector<32x1xf32>
    %117 = vector.broadcast %116 : vector<32x1xf32> to vector<32x32xf32>
    %118 = arith.subf %108, %117 : vector<32x32xf32>
    %119 = arith.mulf %118, %118 : vector<32x32xf32>
    %cst_81 = arith.constant dense<0.000000e+00> : vector<32xf32>
    %120 = vector.multi_reduction <add>, %119, %cst_81 [1] : vector<32x32xf32> to vector<32xf32>
    %121 = vector.shape_cast %120 : vector<32xf32> to vector<32x1xf32>
    %cst_82 = arith.constant 3.200000e+01 : f32
    %122 = vector.broadcast %cst_82 : f32 to vector<32x1xf32>
    %123 = arith.divf %121, %122 : vector<32x1xf32>
    %124 = vector.broadcast %116 : vector<32x1xf32> to vector<32x32xf32>
    %125 = arith.subf %108, %124 : vector<32x32xf32>
    %cst_83 = arith.constant 9.99999974E-6 : f32
    %126 = vector.broadcast %cst_83 : f32 to vector<32x1xf32>
    %127 = arith.addf %123, %126 : vector<32x1xf32>
    %128 = math.rsqrt %127 : vector<32x1xf32>
    %129 = vector.broadcast %128 : vector<32x1xf32> to vector<32x32xf32>
    %130 = arith.mulf %125, %129 : vector<32x32xf32>
    %131 = vector.broadcast %110 : vector<1x32xf32> to vector<32x32xf32>
    %132 = arith.mulf %130, %131 : vector<32x32xf32>
    %133 = vector.broadcast %112 : vector<1x32xf32> to vector<32x32xf32>
    %134 = arith.addf %132, %133 : vector<32x32xf32>
    %135 = vector.extract_strided_slice %134 {offsets = [0, 0], sizes = [16, 32], strides = [1, 1]} : vector<32x32xf32> to vector<16x32xf32>
    %136 = vector.extract_strided_slice %134 {offsets = [16, 0], sizes = [16, 32], strides = [1, 1]} : vector<32x32xf32> to vector<16x32xf32>
    %137 = tpu.concatenate %135, %136 in 1 : vector<16x32xf32>, vector<16x32xf32> -> vector<16x64xf32>
    %c0_84 = arith.constant 0 : index
    %c1_85 = arith.constant 1 : index
    %c0_86 = arith.constant 0 : index
    %c0_87 = arith.constant 0 : index
    %138 = vector.load %arg4[%c0_84, %c1_85, %c0_86, %c0_87] : memref<1x2x4x16xf32, #tpu.memory_space<vmem>>, vector<1x1x4x16xf32>
    %139 = vector.shape_cast %138 : vector<1x1x4x16xf32> to vector<4x16xf32>
    %cst_88 = arith.constant dense<0.000000e+00> : vector<4x64xf32>
    %140 = tpu.matmul %139, %137, %cst_88 {dimension_numbers = #tpu.dot_dimension_numbers<[1], [0], [0], [1], [0, 0, 1, 1], [], []>} : vector<4x16xf32>, vector<16x64xf32>, vector<4x64xf32> -> vector<4x64xf32>
    %c0_89 = arith.constant 0 : index
    %c1_90 = arith.constant 1 : index
    %c0_91 = arith.constant 0 : index
    %c0_92 = arith.constant 0 : index
    %141 = vector.load %arg5[%c0_89, %c1_90, %c0_91, %c0_92] : memref<1x2x4x1xf32, #tpu.memory_space<vmem>>, vector<1x1x4x1xf32>
    %142 = vector.shape_cast %141 : vector<1x1x4x1xf32> to vector<4x1xf32>
    %143 = vector.broadcast %142 : vector<4x1xf32> to vector<4x64xf32>
    %144 = arith.addf %140, %143 : vector<4x64xf32>
    %cst_93 = arith.constant 5.000000e-01 : f32
    %145 = vector.broadcast %cst_93 : f32 to vector<4x64xf32>
    %146 = arith.mulf %145, %144 : vector<4x64xf32>
    %cst_94 = arith.constant 0.707106769 : f32
    %147 = vector.broadcast %cst_94 : f32 to vector<4x64xf32>
    %148 = arith.mulf %144, %147 : vector<4x64xf32>
    %149 = math.erf %148 : vector<4x64xf32>
    %cst_95 = arith.constant 1.000000e+00 : f32
    %150 = vector.broadcast %cst_95 : f32 to vector<4x64xf32>
    %151 = arith.addf %150, %149 : vector<4x64xf32>
    %152 = arith.mulf %146, %151 : vector<4x64xf32>
    %c0_96 = arith.constant 0 : index
    %c1_97 = arith.constant 1 : index
    %c0_98 = arith.constant 0 : index
    %c0_99 = arith.constant 0 : index
    %153 = vector.load %arg6[%c0_96, %c1_97, %c0_98, %c0_99] : memref<1x2x16x4xf32, #tpu.memory_space<vmem>>, vector<1x1x16x4xf32>
    %154 = vector.shape_cast %153 : vector<1x1x16x4xf32> to vector<16x4xf32>
    %cst_100 = arith.constant dense<0.000000e+00> : vector<16x64xf32>
    %155 = tpu.matmul %154, %152, %cst_100 {dimension_numbers = #tpu.dot_dimension_numbers<[1], [0], [0], [1], [0, 0, 1, 1], [], []>} : vector<16x4xf32>, vector<4x64xf32>, vector<16x64xf32> -> vector<16x64xf32>
    %c0_101 = arith.constant 0 : index
    %c1_102 = arith.constant 1 : index
    %c0_103 = arith.constant 0 : index
    %c0_104 = arith.constant 0 : index
    %156 = vector.load %arg7[%c0_101, %c1_102, %c0_103, %c0_104] : memref<1x2x16x1xf32, #tpu.memory_space<vmem>>, vector<1x1x16x1xf32>
    %157 = vector.shape_cast %156 : vector<1x1x16x1xf32> to vector<16x1xf32>
    %158 = vector.broadcast %157 : vector<16x1xf32> to vector<16x64xf32>
    %159 = arith.addf %155, %158 : vector<16x64xf32>
    %160 = vector.extract_strided_slice %159 {offsets = [0, 0], sizes = [16, 32], strides = [1, 1]} : vector<16x64xf32> to vector<16x32xf32>
    %161 = vector.extract_strided_slice %159 {offsets = [0, 32], sizes = [16, 32], strides = [1, 1]} : vector<16x64xf32> to vector<16x32xf32>
    %162 = tpu.concatenate %160, %161 in 0 : vector<16x32xf32>, vector<16x32xf32> -> vector<32x32xf32>
    %163 = arith.addf %108, %162 : vector<32x32xf32>
    %c0_105 = arith.constant 0 : index
    %c1_106 = arith.constant 1 : index
    %c0_107 = arith.constant 0 : index
    %c0_108 = arith.constant 0 : index
    %164 = vector.load %arg8[%c0_105, %c1_106, %c0_107, %c0_108] : memref<1x2x1x32xf32, #tpu.memory_space<vmem>>, vector<1x1x1x32xf32>
    %165 = vector.shape_cast %164 : vector<1x1x1x32xf32> to vector<1x32xf32>
    %c0_109 = arith.constant 0 : index
    %c1_110 = arith.constant 1 : index
    %c0_111 = arith.constant 0 : index
    %c0_112 = arith.constant 0 : index
    %166 = vector.load %arg9[%c0_109, %c1_110, %c0_111, %c0_112] : memref<1x2x1x32xf32, #tpu.memory_space<vmem>>, vector<1x1x1x32xf32>
    %167 = vector.shape_cast %166 : vector<1x1x1x32xf32> to vector<1x32xf32>
    %cst_113 = arith.constant dense<0.000000e+00> : vector<32xf32>
    %168 = vector.multi_reduction <add>, %163, %cst_113 [1] : vector<32x32xf32> to vector<32xf32>
    %169 = vector.shape_cast %168 : vector<32xf32> to vector<32x1xf32>
    %cst_114 = arith.constant 3.200000e+01 : f32
    %170 = vector.broadcast %cst_114 : f32 to vector<32x1xf32>
    %171 = arith.divf %169, %170 : vector<32x1xf32>
    %172 = vector.broadcast %171 : vector<32x1xf32> to vector<32x32xf32>
    %173 = arith.subf %163, %172 : vector<32x32xf32>
    %174 = arith.mulf %173, %173 : vector<32x32xf32>
    %cst_115 = arith.constant dense<0.000000e+00> : vector<32xf32>
    %175 = vector.multi_reduction <add>, %174, %cst_115 [1] : vector<32x32xf32> to vector<32xf32>
    %176 = vector.shape_cast %175 : vector<32xf32> to vector<32x1xf32>
    %cst_116 = arith.constant 3.200000e+01 : f32
    %177 = vector.broadcast %cst_116 : f32 to vector<32x1xf32>
    %178 = arith.divf %176, %177 : vector<32x1xf32>
    %179 = vector.broadcast %171 : vector<32x1xf32> to vector<32x32xf32>
    %180 = arith.subf %163, %179 : vector<32x32xf32>
    %cst_117 = arith.constant 9.99999974E-6 : f32
    %181 = vector.broadcast %cst_117 : f32 to vector<32x1xf32>
    %182 = arith.addf %178, %181 : vector<32x1xf32>
    %183 = math.rsqrt %182 : vector<32x1xf32>
    %184 = vector.broadcast %183 : vector<32x1xf32> to vector<32x32xf32>
    %185 = arith.mulf %180, %184 : vector<32x32xf32>
    %186 = vector.broadcast %165 : vector<1x32xf32> to vector<32x32xf32>
    %187 = arith.mulf %185, %186 : vector<32x32xf32>
    %188 = vector.broadcast %167 : vector<1x32xf32> to vector<32x32xf32>
    %189 = arith.addf %187, %188 : vector<32x32xf32>
    %c0_118 = arith.constant 0 : index
    %c1_119 = arith.constant 1 : index
    %c0_120 = arith.constant 0 : index
    %c0_121 = arith.constant 0 : index
    %190 = vector.load %arg10[%c0_118, %c1_119, %c0_120, %c0_121] : memref<1x2x32x8xf32, #tpu.memory_space<vmem>>, vector<1x1x32x8xf32>
    %191 = vector.shape_cast %190 : vector<1x1x32x8xf32> to vector<32x8xf32>
    %cst_122 = arith.constant dense<0.000000e+00> : vector<32x8xf32>
    %192 = tpu.matmul %189, %191, %cst_122 {dimension_numbers = #tpu.dot_dimension_numbers<[1], [0], [0], [1], [0, 0, 1, 1], [], []>} : vector<32x32xf32>, vector<32x8xf32>, vector<32x8xf32> -> vector<32x8xf32>
    %c0_123 = arith.constant 0 : index
    %c1_124 = arith.constant 1 : index
    %c0_125 = arith.constant 0 : index
    %c0_126 = arith.constant 0 : index
    %193 = vector.load %arg11[%c0_123, %c1_124, %c0_125, %c0_126] : memref<1x2x1x8xf32, #tpu.memory_space<vmem>>, vector<1x1x1x8xf32>
    %194 = vector.shape_cast %193 : vector<1x1x1x8xf32> to vector<1x8xf32>
    %195 = vector.broadcast %194 : vector<1x8xf32> to vector<32x8xf32>
    %196 = arith.addf %192, %195 : vector<32x8xf32>
    %cst_127 = arith.constant 5.000000e-01 : f32
    %197 = vector.broadcast %cst_127 : f32 to vector<32x8xf32>
    %198 = arith.mulf %197, %196 : vector<32x8xf32>
    %cst_128 = arith.constant 0.707106769 : f32
    %199 = vector.broadcast %cst_128 : f32 to vector<32x8xf32>
    %200 = arith.mulf %196, %199 : vector<32x8xf32>
    %201 = math.erf %200 : vector<32x8xf32>
    %cst_129 = arith.constant 1.000000e+00 : f32
    %202 = vector.broadcast %cst_129 : f32 to vector<32x8xf32>
    %203 = arith.addf %202, %201 : vector<32x8xf32>
    %204 = arith.mulf %198, %203 : vector<32x8xf32>
    %c0_130 = arith.constant 0 : index
    %c1_131 = arith.constant 1 : index
    %c0_132 = arith.constant 0 : index
    %c0_133 = arith.constant 0 : index
    %205 = vector.load %arg12[%c0_130, %c1_131, %c0_132, %c0_133] : memref<1x2x8x32xf32, #tpu.memory_space<vmem>>, vector<1x1x8x32xf32>
    %206 = vector.shape_cast %205 : vector<1x1x8x32xf32> to vector<8x32xf32>
    %cst_134 = arith.constant dense<0.000000e+00> : vector<32x32xf32>
    %207 = tpu.matmul %204, %206, %cst_134 {dimension_numbers = #tpu.dot_dimension_numbers<[1], [0], [0], [1], [0, 0, 1, 1], [], []>} : vector<32x8xf32>, vector<8x32xf32>, vector<32x32xf32> -> vector<32x32xf32>
    %c0_135 = arith.constant 0 : index
    %c1_136 = arith.constant 1 : index
    %c0_137 = arith.constant 0 : index
    %c0_138 = arith.constant 0 : index
    %208 = vector.load %arg13[%c0_135, %c1_136, %c0_137, %c0_138] : memref<1x2x1x32xf32, #tpu.memory_space<vmem>>, vector<1x1x1x32xf32>
    %209 = vector.shape_cast %208 : vector<1x1x1x32xf32> to vector<1x32xf32>
    %210 = vector.broadcast %209 : vector<1x32xf32> to vector<32x32xf32>
    %211 = arith.addf %207, %210 : vector<32x32xf32>
    %212 = arith.addf %163, %211 : vector<32x32xf32>
    %c0_139 = arith.constant 0 : index
    %c0_140 = arith.constant 0 : index
    %c0_141 = arith.constant 0 : index
    %213 = vector.load %arg14[%c0_139, %c0_140, %c0_141] : memref<1x1x32xf32, #tpu.memory_space<vmem>>, vector<1x1x32xf32>
    %214 = vector.shape_cast %213 : vector<1x1x32xf32> to vector<1x32xf32>
    %215 = tpu.transpose %212, [1, 0] : vector<32x32xf32> -> vector<32x32xf32>
    %cst_142 = arith.constant dense<0.000000e+00> : vector<1x32xf32>
    %216 = tpu.matmul %214, %215, %cst_142 {dimension_numbers = #tpu.dot_dimension_numbers<[1], [0], [0], [1], [0, 0, 1, 1], [], []>} : vector<1x32xf32>, vector<32x32xf32>, vector<1x32xf32> -> vector<1x32xf32>
    %c0_143 = arith.constant 0 : index
    %c0_144 = arith.constant 0 : index
    %c0_145 = arith.constant 0 : index
    %217 = vector.load %arg15[%c0_143, %c0_144, %c0_145] : memref<1x1x1xf32, #tpu.memory_space<vmem>>, vector<1x1x1xf32>
    %218 = vector.shape_cast %217 : vector<1x1x1xf32> to vector<1x1xf32>
    %219 = vector.broadcast %218 : vector<1x1xf32> to vector<1x32xf32>
    %220 = arith.addf %216, %219 : vector<1x32xf32>
    %c0_146 = arith.constant 0 : index
    %c0_147 = arith.constant 0 : index
    %c0_148 = arith.constant 0 : index
    %221 = vector.load %arg16[%c0_146, %c0_147, %c0_148] : memref<1x1x32xf32, #tpu.memory_space<vmem>>, vector<1x1x32xf32>
    %222 = vector.shape_cast %221 : vector<1x1x32xf32> to vector<1x32xf32>
    %223 = vector.shape_cast %220 : vector<1x32xf32> to vector<1x1x32xf32>
    tpu.vector_store %arg16[%c0_146, %c0_147, %c0_148], %223 {strides = array<i32>} : memref<1x1x32xf32, #tpu.memory_space<vmem>>, vector<1x1x32xf32>,
    return
  }
  func.func @transform_0(%arg0: i32) -> (i32, i32, i32) {
    %c0_i32 = arith.constant 0 : i32
    %c0_i32_0 = arith.constant 0 : i32
    %c0_i32_1 = arith.constant 0 : i32
    %c0_i32_2 = arith.constant 0 : i32
    return %c0_i32, %c0_i32_0, %c0_i32_1 : i32, i32, i32
  }
  func.func @transform_1(%arg0: i32) -> (i32, i32, i32, i32) {
    %c0_i32 = arith.constant 0 : i32
    %c0_i32_0 = arith.constant 0 : i32
    %c0_i32_1 = arith.constant 0 : i32
    %c0_i32_2 = arith.constant 0 : i32
    return %arg0, %c0_i32, %c0_i32_0, %c0_i32_1 : i32, i32, i32, i32
  }
  func.func @transform_2(%arg0: i32) -> (i32, i32, i32, i32) {
    %c0_i32 = arith.constant 0 : i32
    %c0_i32_0 = arith.constant 0 : i32
    %c0_i32_1 = arith.constant 0 : i32
    %c0_i32_2 = arith.constant 0 : i32
    return %arg0, %c0_i32, %c0_i32_0, %c0_i32_1 : i32, i32, i32, i32
  }
  func.func @transform_3(%arg0: i32) -> (i32, i32, i32, i32) {
    %c0_i32 = arith.constant 0 : i32
    %c0_i32_0 = arith.constant 0 : i32
    %c0_i32_1 = arith.constant 0 : i32
    %c0_i32_2 = arith.constant 0 : i32
    return %arg0, %c0_i32, %c0_i32_0, %c0_i32_1 : i32, i32, i32, i32
  }
  func.func @transform_4(%arg0: i32) -> (i32, i32, i32, i32) {
    %c0_i32 = arith.constant 0 : i32
    %c0_i32_0 = arith.constant 0 : i32
    %c0_i32_1 = arith.constant 0 : i32
    %c0_i32_2 = arith.constant 0 : i32
    return %arg0, %c0_i32, %c0_i32_0, %c0_i32_1 : i32, i32, i32, i32
  }
  func.func @transform_5(%arg0: i32) -> (i32, i32, i32, i32) {
    %c0_i32 = arith.constant 0 : i32
    %c0_i32_0 = arith.constant 0 : i32
    %c0_i32_1 = arith.constant 0 : i32
    %c0_i32_2 = arith.constant 0 : i32
    return %arg0, %c0_i32, %c0_i32_0, %c0_i32_1 : i32, i32, i32, i32
  }
  func.func @transform_6(%arg0: i32) -> (i32, i32, i32, i32) {
    %c0_i32 = arith.constant 0 : i32
    %c0_i32_0 = arith.constant 0 : i32
    %c0_i32_1 = arith.constant 0 : i32
    %c0_i32_2 = arith.constant 0 : i32
    return %arg0, %c0_i32, %c0_i32_0, %c0_i32_1 : i32, i32, i32, i32
  }
  func.func @transform_7(%arg0: i32) -> (i32, i32, i32, i32) {
    %c0_i32 = arith.constant 0 : i32
    %c0_i32_0 = arith.constant 0 : i32
    %c0_i32_1 = arith.constant 0 : i32
    %c0_i32_2 = arith.constant 0 : i32
    return %arg0, %c0_i32, %c0_i32_0, %c0_i32_1 : i32, i32, i32, i32
  }
  func.func @transform_8(%arg0: i32) -> (i32, i32, i32, i32) {
    %c0_i32 = arith.constant 0 : i32
    %c0_i32_0 = arith.constant 0 : i32
    %c0_i32_1 = arith.constant 0 : i32
    %c0_i32_2 = arith.constant 0 : i32
    return %arg0, %c0_i32, %c0_i32_0, %c0_i32_1 : i32, i32, i32, i32
  }
  func.func @transform_9(%arg0: i32) -> (i32, i32, i32, i32) {
    %c0_i32 = arith.constant 0 : i32
    %c0_i32_0 = arith.constant 0 : i32
    %c0_i32_1 = arith.constant 0 : i32
    %c0_i32_2 = arith.constant 0 : i32
    return %arg0, %c0_i32, %c0_i32_0, %c0_i32_1 : i32, i32, i32, i32
  }
  func.func @transform_10(%arg0: i32) -> (i32, i32, i32, i32) {
    %c0_i32 = arith.constant 0 : i32
    %c0_i32_0 = arith.constant 0 : i32
    %c0_i32_1 = arith.constant 0 : i32
    %c0_i32_2 = arith.constant 0 : i32
    return %arg0, %c0_i32, %c0_i32_0, %c0_i32_1 : i32, i32, i32, i32
  }
  func.func @transform_11(%arg0: i32) -> (i32, i32, i32, i32) {
    %c0_i32 = arith.constant 0 : i32
    %c0_i32_0 = arith.constant 0 : i32
    %c0_i32_1 = arith.constant 0 : i32
    %c0_i32_2 = arith.constant 0 : i32
    return %arg0, %c0_i32, %c0_i32_0, %c0_i32_1 : i32, i32, i32, i32
  }
  func.func @transform_12(%arg0: i32) -> (i32, i32, i32, i32) {
    %c0_i32 = arith.constant 0 : i32
    %c0_i32_0 = arith.constant 0 : i32
    %c0_i32_1 = arith.constant 0 : i32
    %c0_i32_2 = arith.constant 0 : i32
    return %arg0, %c0_i32, %c0_i32_0, %c0_i32_1 : i32, i32, i32, i32
  }
  func.func @transform_13(%arg0: i32) -> (i32, i32, i32) {
    %c0_i32 = arith.constant 0 : i32
    %c0_i32_0 = arith.constant 0 : i32
    %c0_i32_1 = arith.constant 0 : i32
    return %arg0, %c0_i32, %c0_i32_0 : i32, i32, i32
  }
  func.func @transform_14(%arg0: i32) -> (i32, i32, i32) {
    %c0_i32 = arith.constant 0 : i32
    %c0_i32_0 = arith.constant 0 : i32
    %c0_i32_1 = arith.constant 0 : i32
    return %arg0, %c0_i32, %c0_i32_0 : i32, i32, i32
  }
  func.func @transform_15(%arg0: i32) -> (i32, i32, i32) {
    %c0_i32 = arith.constant 0 : i32
    %c0_i32_0 = arith.constant 0 : i32
    %c0_i32_1 = arith.constant 0 : i32
    return %arg0, %c0_i32, %c0_i32_0 : i32, i32, i32
  }
}

</mosaic_0001>

<bundles_post_ra>
// kernel: tpu_custom_call.1
= control target key start
LH: loop header
LB: loop body
LE: loop exit
PB: predicated region body
PF: predicated region fallthrough
CT: control target
= control target key end

     0   :  { %s3135_s0 = inlined_call_operand.vmem [shape: f32[2,16,32], index: 0, kind: input, shape index: {}]   ;;  %s3136_s1 = inlined_call_operand.vmem [shape: f32[2,2,1,32], index: 1, kind: input, shape index: {}]   ;;  %s3137_s2 = inlined_call_operand.vmem [shape: f32[2,2,1,32], index: 2, kind: input, shape index: {}]   ;;  %s3138_s3 = inlined_call_operand.vmem [shape: f32[2,2,4,16], index: 3, kind: input, shape index: {}]   ;;  %s3139_s4 = inlined_call_operand.vmem [shape: f32[2,2,4,1], index: 4, kind: input, shape index: {}]   ;;  %s3140_s5 = inlined_call_operand.vmem [shape: f32[2,2,16,4], index: 5, kind: input, shape index: {}]   ;;  %s3141_s6 = inlined_call_operand.vmem [shape: f32[2,2,16,1], index: 6, kind: input, shape index: {}]   ;;  %s3142_s7 = inlined_call_operand.vmem [shape: f32[2,2,1,32], index: 7, kind: input, shape index: {}]   ;;  %s3143_s8 = inlined_call_operand.vmem [shape: f32[2,2,1,32], index: 8, kind: input, shape index: {}]   ;;  %s3144_s9 = inlined_call_operand.vmem [shape: f32[2,2,32,8], index: 9, kind: input, shape index: {}]   ;;  %s3145_s10 = inlined_call_operand.vmem [shape: f32[2,2,1,8], index: 10, kind: input, shape index: {}]   ;;  %s3146_s11 = inlined_call_operand.vmem [shape: f32[2,2,8,32], index: 11, kind: input, shape index: {}]   ;;  %s3147_s12 = inlined_call_operand.vmem [shape: f32[2,2,1,32], index: 12, kind: input, shape index: {}]   ;;  %s3148_s13 = inlined_call_operand.vmem [shape: f32[2,1,32], index: 13, kind: input, shape index: {}]   ;;  %s3149_s14 = inlined_call_operand.vmem [shape: f32[2,1,1], index: 14, kind: input, shape index: {}]   ;;  %s3150_s15 = inlined_call_operand.hbm [shape: f32[2,1,32], index: 15, kind: output, shape index: {}]  }
   0x1   :  { %3157 = sst [smem:[#allocation8_spill]] %s3135_s0 }
   0x2   :  { %3158 = sst [smem:[#allocation9_spill]] %s3136_s1 }
   0x3   :  { %3159 = sst [smem:[#allocation10_spill]] %s3137_s2 }
   0x4   :  { %3160 = sst [smem:[#allocation11_spill]] %s3138_s3 }
   0x5   :  { %3161 = sst [smem:[#allocation12_spill]] %s3139_s4 }
   0x6   :  { %3162 = sst [smem:[#allocation13_spill]] %s3140_s5 }
   0x7   :  { %3163 = sst [smem:[#allocation14_spill]] %s3141_s6 }
   0x8   :  { %3164 = sst [smem:[#allocation15_spill]] %s3142_s7 }
   0x9   :  { %3165 = sst [smem:[#allocation16_spill]] %s3143_s8 }
   0xa   :  { %20 = vsyncpa [#allocation3], 0 }
   0xb   :  { %22 = vsyncpa [#allocation3 + $0x1], 0  ;;  %s2744_s18 = smov 0   ;;  %s2746_s19 = smov 0  }
   0xc   :  { %s2748_s20 = smov 0   ;;  %s2750_s21 = smov 0  }
   0xd LB: > { %3166 = sst [smem:[#allocation5_spill]] %s2651_s20  ;;  %s2765_s22 = sadd.s32 4294967295, %s2655_s21   ;;  %s2655_s21 = sphi %s2750_s21, %s3182_s21   ;;  %s2651_s20 = sphi %s2748_s20, %s3184_s20   ;;  %s2647_s19 = sphi %s2746_s19, %s3186_s19   ;;  %s2643_s18 = sphi %s2744_s18, %s3185_s18  }
   0xe   : > { %s2241_s23 = sadd.s32 4294967294, %s2655_s21   ;;  %s2769_s24 = sadd.s32 1, %s2655_s21  }
   0xf   : > { %3167 = sst [smem:[#allocation6_spill]] %s2769_s24  ;;  %s420_s25 = sadd.s32 1, %s2651_s20 }
  0x10   : > { %s417_s26 = ssub.s32 %s2655_s21, %s2769_s24  ;;  %p430_p0 = scmp.ne.s32.totalorder %s2651_s20, %s2647_s19 }
  0x11   : > { %p418_p1 = scmp.eq.s32.totalorder %s417_s26, 0  ;;  %p431_p2 = scmp.eq.s32.totalorder %s2765_s22, 1 }
  0x12   : > { %p436_p3 = scmp.ne.s32.totalorder %s2647_s19, %s2643_s18  ;;  %p437_p4 = scmp.eq.s32.totalorder %s2241_s23, 1 }
  0x13   : > { %s2780_s27 = scalar_select %p418_p1, %s2651_s20, %s420_s25  }
  0x14   : > { %p2782_p5 = por %p431_p2, %p430_p0  ;;  %p2786_p6 = por %p437_p4, %p436_p3 }
  0x15   : > { %3168 = sst [smem:[#allocation7_spill]] %s2780_s27  ;;  %p2244_p7 = scmp.ge.s32.totalorder %s2655_s21, 1 }
  0x16   : > { %p560_p8 = scmp.lt.s32.totalorder %s2655_s21, 3 }
  0x18   : > { %p561_p9 = pnand %p2244_p7, %p560_p8 }
  0x19   : > { %s3171_s0 = sld [smem:[#allocation8_spill]] (!%p561_p9)  ;;  %vm729_vm0 = vcmask (!%p561_p9), 261120   ;;  %p662_p10 = scmp.lt.s32.totalorder (!%p561_p9), %s2765_s22, 1  ;;  %v2657_v42 = vmov (!%p561_p9), 0.0|0.0   ;;  %vm2658_vm1 = vmmov (!%p561_p9), 0   ;;  %v2659_v51 = vmov (!%p561_p9), 0.0  }
  0x1a   : > { %564 = sbr.rel (%p561_p9) target bundleno = 3814 (0xee6), region = 80  ;;  %s3172_s1 = sld [smem:[#allocation9_spill]] (!%p561_p9)  ;;  %2454 = vmatprep.subr.bf16.mxu0 (!%p561_p9), %v2657_v42  ;;  %2379 = vmatprep.mubr.msk.f32.mxu0 (!%p561_p9), %vm2658_vm1, %v2659_v51  ;;  %v2660_v58 = vmov (!%p561_p9), 0   ;;  %vm820_vm2 = vcmask (!%p561_p9), 130048   ;;  %vm913_vm3 = vcmask (!%p561_p9), 31744   ;;  %vm920_vm4 = vcmask (!%p561_p9), 1043456   ;;  %vm2478_vm6 = vmpackc.low (!%p561_p9), %vm729_vm0, %vm729_vm0 }
  0x1b   : > { %s3173_s2 = sld [smem:[#allocation10_spill]] (!%p561_p9)  ;;  %s3174_s4 = sld [smem:[#allocation12_spill]] (!%p561_p9)  ;;  %2534 = vset.pattern.permute.xlu1 (!%p561_p9), %v2660_v58  ;;  %2540 = vset.pattern.permute.xlu0 (!%p561_p9), %v2660_v58  ;;  %vm1221_vm5 = vcmask (!%p561_p9), 64512   ;;  %vm2021_vm7 = vcmask (!%p561_p9), 253952  }
  0x1c   : > { %s3175_s6 = sld [smem:[#allocation14_spill]] (!%p561_p9)  ;;  %s3176_s3 = sld [smem:[#allocation11_spill]] (!%p561_p9) }
  0x1d   : > { %s3177_s5 = sld [smem:[#allocation13_spill]] (!%p561_p9)  ;;  %s3178_s7 = sld [smem:[#allocation15_spill]] (!%p561_p9) }
  0x1e   : > { %s3179_s8 = sld [smem:[#allocation16_spill]] (!%p561_p9) }
  0x1f   : > { %v2795_v0 = vld [vmem:[%s3171_s0 + $0x10] sm:$0xff] (!%p561_p9)  ;;  %v2800_v1 = vld [vmem:[%s3171_s0 + $0x18] sm:$0xff] (!%p561_p9)  ;;  %v2805_v2 = vld [vmem:[%s3171_s0] sm:$0xff] (!%p561_p9) }
  0x20   : > { %v736_v3 = vsel (!%p561_p9), %vm729_vm0, %v2795_v0, 0.0  ;;  %v730_v4 = vsel (!%p561_p9), %vm729_vm0, %v2805_v2, 0.0  ;;  %v2814_v5 = vld [vmem:[%s3171_s0 + $0x8] sm:$0xff] (!%p561_p9)  ;;  %v739_v6 = vsel (!%p561_p9), %vm729_vm0, %v2800_v1, 0.0  ;;  %s3154_s0 = smov (!%p561_p9), 32  }
  0x21   : > { %737 = vadd.xlane.f32.xlu0 %v736_v3  ;;  %731 = vadd.xlane.f32.xlu1 %v730_v4  ;;  %v733_v7 = vsel %vm729_vm0, %v2814_v5, 0.0  ;;  %s2830_s17 = scalar_select %p662_p10, %s2765_s22, 1 }
  0x23   : > { %s2833_s23 = sshll.u32 %s2830_s17, 1  ;;  %s2326_s25 = sshll.u32 %s2830_s17, 3 }
  0x24   : > { %s2839_s30 = scalar_lea.vmem %s3172_s1, %s2833_s23  ;;  %s2847_s27 = scalar_lea.vmem %s3173_s2, %s2833_s23 }
  0x25   : > { %740 = vadd.xlane.f32.xlu0 %v739_v6  ;;  %734 = vadd.xlane.f32.xlu1 %v733_v7  ;;  %v2265_v43 = vld [vmem:[%s2839_s30] ss:$0 sm:$0xff]  ;;  %s2856_s16 = scalar_lea.vmem %s3174_s4, %s2326_s25  ;;  %s2328_s1 = sshll.u32 %s2830_s17, 5 }
  0x26   : > { %v2266_v49 = vld [vmem:[%s2847_s27] ss:$0 sm:$0xff]  ;;  %s2865_s24 = scalar_lea.vmem %s3175_s6, %s2328_s1  ;;  %s2875_s26 = scalar_lea.vmem %s3176_s3, %s2326_s25 }
  0x27   : > { %v814_v59 = vld [vmem:[%s2856_s16] sm:$0xf]  ;;  %v902_v3 = vld [vmem:[%s2865_s24 + $0x8] sm:$0xff]  ;;  %s2884_s6 = scalar_lea.vmem %s3177_s5, %s2328_s1  ;;  %s3155_s1 = smov 96  }
  0x28   : > { %v901_v62 = vld [vmem:[%s2865_s24] sm:$0xff]  ;;  %s2330_s4 = sshll.u32 %s2830_s17, 6  ;;  %s2936_s25 = scalar_lea.vmem %s3178_s7, %s2833_s23 }
  0x29   : > { %s2922_s2 = scalar_lea.vmem %s3144_s9, %s2330_s4  ;;  %s2942_s3 = scalar_lea.vmem %s3179_s8, %s2833_s23 }
  0x2a   : > { %s2962_s8 = scalar_lea.vmem %s3145_s10, %s2833_s23 }
  0xae   : > { %v738_v8 = vpop.xlane.xlu0 %737  ;;  %v732_v9 = vpop.xlane.xlu1 %731 }
  0xaf   : > { %v745_v10 = vmul.f32 0.03125, %v738_v8  ;;  %v743_v11 = vmul.f32 0.03125, %v732_v9 }
  0xb1   : > { %v749_v12 = vsub.f32 %v2795_v0, %v745_v10  ;;  %v747_v13 = vsub.f32 %v2805_v2, %v743_v11  ;;  %v813_v11 = vld [vmem:[%s2875_s26] sm:$0xf] }
  0xb2   : > { %v741_v14 = vpop.xlane.xlu0 %740  ;;  %v735_v15 = vpop.xlane.xlu1 %734 }
  0xb3   : > { %v746_v16 = vmul.f32 0.03125, %v741_v14  ;;  %v753_v17 = vmul.f32 %v749_v12, %v749_v12  ;;  %v744_v18 = vmul.f32 0.03125, %v735_v15  ;;  %v751_v19 = vmul.f32 %v747_v13, %v747_v13 }
  0xb5   : > { %v750_v20 = vsub.f32 %v2800_v1, %v746_v16  ;;  %v761_v21 = vsel %vm729_vm0, %v753_v17, 0.0  ;;  %v748_v22 = vsub.f32 %v2814_v5, %v744_v18  ;;  %v755_v24 = vsel %vm729_vm0, %v751_v19, 0.0 }
  0xb6   : > { %762 = vadd.xlane.f32.xlu0 %v761_v21 }
  0xb7   : > { %v754_v23 = vmul.f32 %v750_v20, %v750_v20  ;;  %v752_v25 = vmul.f32 %v748_v22, %v748_v22 }
  0xb9   : > { %v764_v26 = vsel %vm729_vm0, %v754_v23, 0.0  ;;  %v758_v27 = vsel %vm729_vm0, %v752_v25, 0.0 }
  0xba   : > { %765 = vadd.xlane.f32.xlu1 %v764_v26  ;;  %756 = vadd.xlane.f32.xlu0 %v755_v24 }
  0xbe   : > { %759 = vadd.xlane.f32.xlu1 %v758_v27 }
  0xcf   : > { %817 = vperm.xlu1 %2534, %v814_v59  }
  0xd3   : > { %905 = vperm.xlu1 %2534, %v901_v62  }
  0xd7   : > { %910 = vperm.xlu1 %2534, %v902_v3  }
 0x143   : > { %v763_v28 = vpop.xlane.xlu0 %762 }
 0x144   : > { %v769_v29 = vmul.f32 0.03125, %v763_v28 }
 0x146   : > { %v773_v30 = vadd.f32 1e-05, %v769_v29 }
 0x147   : > { %v757_v31 = vpop.xlane.xlu0 %756  ;;  %v766_v32 = vpop.xlane.xlu1 %765 }
 0x148   : > { %2541 = vrsqrt.f32 %v773_v30  ;;  %v767_v33 = vmul.f32 0.03125, %v757_v31  ;;  %v770_v34 = vmul.f32 0.03125, %v766_v32 }
 0x14a   : > { %v771_v35 = vadd.f32 1e-05, %v767_v33  ;;  %v774_v36 = vadd.f32 1e-05, %v770_v34 }
 0x14b   : > { %v760_v37 = vpop.xlane.xlu1 %759 }
 0x14c   : > { %2543 = vrsqrt.f32 %v771_v35  ;;  %v768_v38 = vmul.f32 0.03125, %v760_v37 }
 0x14d   : > { %2545 = vrsqrt.f32 %v774_v36 }
 0x14e   : > { %v772_v39 = vadd.f32 1e-05, %v768_v38 }
 0x150   : > { %2547 = vrsqrt.f32 %v772_v39 }
 0x152   : > { %v2542_v40 = vpop.eup %2541 }
 0x153   : > { %v781_v41 = vmul.f32 %v2542_v40, %v749_v12  ;;  %v899_v12 = vld [vmem:[%s2884_s6] sm:$0xff] }
 0x154   : > { %2384 = vmatprep.mubr.msk.f32.mxu1 %vm913_vm3, %v899_v12  ;;  %v2272_v12 = vld [vmem:[%s2942_s3] ss:$0 sm:$0xff] }
 0x155   : > { %v791_v48 = vmul.f32 %v2265_v43, %v781_v41 }
 0x156   : > { %v2544_v44 = vpop.eup %2543 }
 0x157   : > { %v2546_v45 = vpop.eup %2545  ;;  %v779_v46 = vmul.f32 %v2544_v44, %v747_v13  ;;  %v801_v56 = vadd.f32 %v2266_v49, %v791_v48  ;;  %v818_v13 = vpop.permute.xlu1 %817 }
 0x158   : > { %v782_v47 = vmul.f32 %v2546_v45, %v750_v20 }
 0x159   : > { %v789_v50 = vmul.f32 %v2265_v43, %v779_v46  ;;  %v1085_v46 = vld [vmem:[%s2922_s2] sm:$0xff] }
 0x15a   : > { %v2548_v52 = vpop.eup %2547  ;;  %v792_v53 = vmul.f32 %v2265_v43, %v782_v47  ;;  %v1086_v47 = vld [vmem:[%s2922_s2 + $0x8] sm:$0xff] }
 0x15b   : > { %v780_v54 = vmul.f32 %v2548_v52, %v748_v22  ;;  %v799_v55 = vadd.f32 %v2266_v49, %v789_v50  ;;  %v900_v22 = vld [vmem:[%s2884_s6 + $0x8] sm:$0xff]  ;;  %v906_v23 = vpop.permute.xlu1 %905  ;;  %v2457_v48 = vpack.c.bf16 %v1086_v47, %v1085_v46  ;;  %v1088_v50 = vld [vmem:[%s2922_s2 + $0x18] sm:$0xff] }
 0x15c   : > { %v802_v57 = vadd.f32 %v2266_v49, %v792_v53 }
 0x15d   : > { %v790_v60 = vmul.f32 %v2265_v43, %v780_v54 }
 0x15e   : > { %v2529_v61 = vpack.i.bf16 %v802_v57, %v801_v56 }
 0x15f   : > { %v800_v63 = vadd.f32 %v2266_v49, %v790_v60  ;;  %v911_v24 = vpop.permute.xlu1 %910  ;;  %v1087_v49 = vld [vmem:[%s2922_s2 + $0x10] sm:$0xff] }
 0x160   : > { %2530 = vrot.lane.b32.xlu0 %v2529_v61, %s3154_s0  ;;  %v2461_v52 = vpack.c.bf16 %v1088_v50, %v1087_v49 }
 0x1d2   : > { %v2531_v4 = vpop.permute.xlu0 %2530 }
 0x1d3   : > { %v2533_v6 = vunpack.i.h.bf16 %v2531_v4  ;;  %v2532_v7 = vunpack.i.l.bf16 %v2531_v4 }
 0x1d5   : > { %v811_v8 = vsel %vm729_vm0, %v799_v55, %v2532_v7  ;;  %v812_v9 = vsel %vm729_vm0, %v800_v63, %v2533_v6 }
 0x1d6   : > { %v2455_v10 = vpack.c.bf16 %v812_v9, %v811_v8 }
 0x1d8   : > { %2456 = vmatpush3.bf16.msra.mxu0 %v2455_v10  ;;  %v2271_v10 = vld [vmem:[%s2936_s25] ss:$0 sm:$0xff] }
 0x1db   : > { %2380 = vmatmul.mubr.msk.f32.vlgmr.msra.gmra.mrb[0].mxu0 %vm820_vm2, %v813_v11 }
 0x2ae   : > { %v890_v14 = vpop.f32.mrb[0].mxu0 }
 0x2af   : > { %v891_v15 = vadd.f32 %v890_v14, %v818_v13  ;;  %v2381_v16 = vpop.f32.mrb[1].mxu0 }
 0x2b1   : > { %v895_v17 = vmul.f32 0.70710677, %v891_v15  ;;  %v894_v19 = vmul.f32 0.5, %v891_v15 }
 0x2b3   : > { %2549 = verf.f32 %v895_v17 }
 0x2bd   : > { %v2550_v18 = vpop.eup %2549 }
 0x2be   : > { %v897_v20 = vadd.f32 1.0, %v2550_v18 }
 0x2c0   : > { %v898_v21 = vmul.f32 %v897_v20, %v894_v19 }
 0x2c2   : > { %2382 = vmatprep.subr.msk.mxu1 %vm920_vm4, %v898_v21 }
 0x2c3   : > { %2383 = vmatpush3.msk.msra.mxu1 %vm920_vm4, %v898_v21 }
 0x2c4   : > { %2385 = vmatmul.mubr.msk.f32.vlgmr.msra.gmra.mrb[0].mxu1 %vm913_vm3, %v900_v22  ;;  %2458 = vmatprep.subr.bf16.mxu1 %v2457_v48 }
 0x2c5   : > { %2460 = vmatpush3.bf16.msra.mxu1 %v2457_v48 }
 0x2c6   : > { %2462 = vmatprep.subr.bf16.mxu1 %v2461_v52 }
 0x2c9   : > { %2464 = vmatpush3.bf16.msra.mxu1 %v2461_v52 }
 0x397   : > { %v2386_v25 = vpop.f32.mrb[0].mxu1 }
 0x398   : > { %v996_v26 = vadd.f32 %v2386_v25, %v911_v24  ;;  %v990_v27 = vpop.f32.mrb[1].mxu1 }
 0x399   : > { %v991_v28 = vadd.f32 %v990_v27, %v906_v23 }
 0x39a   : > { %1003 = vrot.lane.b32.xlu1 %v996_v26, %s3155_s1  ;;  %v2898_v30 = vadd.f32 %v996_v26, %v2814_v5 }
 0x39b   : > { %1001 = vrot.lane.b32.xlu0 %v991_v28, %s3155_s1  ;;  %v2895_v29 = vadd.f32 %v991_v28, %v2805_v2  ;;  %s2331_s1 = sshll.u32 %s2830_s17, 4 }
 0x39c   : > { %v1016_v32 = vsel %vm729_vm0, %v2898_v30, 0.0  ;;  %s2954_s0 = scalar_lea.vmem %s3146_s11, %s2331_s1  ;;  %s2975_s1 = scalar_lea.vmem %s3147_s12, %s2833_s23 }
 0x39d   : > { %v1013_v31 = vsel %vm729_vm0, %v2895_v29, 0.0 }
 0x3ba   : > { %1014 = vadd.xlane.f32.xlu0 %v1013_v31 }
 0x3be   : > { %1017 = vadd.xlane.f32.xlu1 %v1016_v32 }
 0x40c   : > { %v1004_v33 = vpop.permute.xlu1 %1003 }
 0x40d   : > { %v1002_v34 = vpop.permute.xlu0 %1001  ;;  %v2908_v36 = vadd.f32 %v2800_v1, %v1004_v33 }
 0x40e   : > { %v2905_v35 = vadd.f32 %v2795_v0, %v1002_v34 }
 0x40f   : > { %v1022_v5 = vsel %vm729_vm0, %v2908_v36, 0.0 }
 0x410   : > { %v1019_v2 = vsel %vm729_vm0, %v2905_v35, 0.0 }
 0x411   : > { %1020 = vadd.xlane.f32.xlu0 %v1019_v2  ;;  %v1213_v2 = vld [vmem:[%s2954_s0] sm:$0xff] }
 0x412   : > { %2401 = vmatprep.subr.mxu0 %v1213_v2 }
 0x413   : > { %2402 = vmatpush3.msra.mxu0 %v1213_v2 }
 0x414   : > { %2465 = vmatprep.subr.bf16.mxu0 %v2657_v42 }
 0x415   : > { %1023 = vadd.xlane.f32.xlu0 %v1022_v5  ;;  %v2273_v5 = vld [vmem:[%s2962_s8] ss:$0 sm:$0xff] }
 0x447   : > { %v1015_v37 = vpop.xlane.xlu0 %1014 }
 0x448   : > { %v1025_v38 = vmul.f32 0.03125, %v1015_v37 }
 0x44a   : > { %v1029_v39 = vsub.f32 %v2895_v29, %v1025_v38 }
 0x44b   : > { %v1018_v40 = vpop.xlane.xlu1 %1017 }
 0x44c   : > { %v1026_v41 = vmul.f32 0.03125, %v1018_v40  ;;  %v1033_v0 = vmul.f32 %v1029_v39, %v1029_v39 }
 0x44e   : > { %v1030_v43 = vsub.f32 %v2898_v30, %v1026_v41  ;;  %v1037_v1 = vsel %vm729_vm0, %v1033_v0, 0.0 }
 0x44f   : > { %1038 = vadd.xlane.f32.xlu0 %v1037_v1 }
 0x450   : > { %v1034_v44 = vmul.f32 %v1030_v43, %v1030_v43 }
 0x452   : > { %v1040_v45 = vsel %vm729_vm0, %v1034_v44, 0.0 }
 0x453   : > { %1041 = vadd.xlane.f32.xlu1 %v1040_v45 }
 0x49e   : > { %v1021_v53 = vpop.xlane.xlu0 %1020 }
 0x49f   : > { %v1027_v54 = vmul.f32 0.03125, %v1021_v53 }
 0x4a1   : > { %v1031_v55 = vsub.f32 %v2905_v35, %v1027_v54 }
 0x4a2   : > { %v1024_v56 = vpop.xlane.xlu0 %1023 }
 0x4a3   : > { %v1028_v57 = vmul.f32 0.03125, %v1024_v56  ;;  %v1035_v58 = vmul.f32 %v1031_v55, %v1031_v55 }
 0x4a5   : > { %v1032_v59 = vsub.f32 %v2908_v36, %v1028_v57  ;;  %v1043_v60 = vsel %vm729_vm0, %v1035_v58, 0.0 }
 0x4a6   : > { %1044 = vadd.xlane.f32.xlu0 %v1043_v60 }
 0x4a7   : > { %v1036_v61 = vmul.f32 %v1032_v59, %v1032_v59 }
 0x4a9   : > { %v1046_v62 = vsel %vm729_vm0, %v1036_v61, 0.0 }
 0x4aa   : > { %1047 = vadd.xlane.f32.xlu1 %v1046_v62 }
 0x4dc   : > { %v1039_v63 = vpop.xlane.xlu0 %1038 }
 0x4dd   : > { %v1049_v3 = vmul.f32 0.03125, %v1039_v63 }
 0x4df   : > { %v1053_v4 = vadd.f32 1e-05, %v1049_v3 }
 0x4e0   : > { %v1042_v6 = vpop.xlane.xlu1 %1041 }
 0x4e1   : > { %2551 = vrsqrt.f32 %v1053_v4  ;;  %v1050_v7 = vmul.f32 0.03125, %v1042_v6 }
 0x4e3   : > { %v1054_v8 = vadd.f32 1e-05, %v1050_v7  ;;  %v2278_v7 = vld [vmem:[%s2975_s1] ss:$0 sm:$0xff] }
 0x4e5   : > { %2553 = vrsqrt.f32 %v1054_v8 }
 0x4eb   : > { %v2552_v9 = vpop.eup %2551 }
 0x4ec   : > { %v1061_v11 = vmul.f32 %v2552_v9, %v1029_v39 }
 0x4ee   : > { %v1071_v13 = vmul.f32 %v2271_v10, %v1061_v11 }
 0x4ef   : > { %v2554_v14 = vpop.eup %2553 }
 0x4f0   : > { %v1062_v15 = vmul.f32 %v2554_v14, %v1030_v43  ;;  %v1081_v16 = vadd.f32 %v2272_v12, %v1071_v13 }
 0x4f2   : > { %2395 = vmatprep.mubr.msk.f32.mxu1 %vm729_vm0, %v1081_v16  ;;  %v1072_v17 = vmul.f32 %v2271_v10, %v1062_v15 }
 0x4f4   : > { %v1082_v18 = vadd.f32 %v2272_v12, %v1072_v17 }
 0x4f6   : > { %2396 = vmatmul.mubr.msk.f32.vlgmr.msra.gmra.mrb[2].mxu1 %vm729_vm0, %v1082_v18 }
 0x533   : > { %v1045_v19 = vpop.xlane.xlu0 %1044 }
 0x534   : > { %v1051_v20 = vmul.f32 0.03125, %v1045_v19 }
 0x536   : > { %v1055_v21 = vadd.f32 1e-05, %v1051_v20 }
 0x537   : > { %v1048_v22 = vpop.xlane.xlu1 %1047 }
 0x538   : > { %2555 = vrsqrt.f32 %v1055_v21  ;;  %v1052_v23 = vmul.f32 0.03125, %v1048_v22 }
 0x53a   : > { %v1056_v24 = vadd.f32 1e-05, %v1052_v23 }
 0x53c   : > { %2557 = vrsqrt.f32 %v1056_v24 }
 0x542   : > { %v2556_v25 = vpop.eup %2555 }
 0x543   : > { %v1063_v26 = vmul.f32 %v2556_v25, %v1031_v55 }
 0x545   : > { %v1073_v27 = vmul.f32 %v2271_v10, %v1063_v26 }
 0x546   : > { %v2558_v28 = vpop.eup %2557 }
 0x547   : > { %v1083_v31 = vadd.f32 %v2272_v12, %v1073_v27  ;;  %v1064_v32 = vmul.f32 %v2558_v28, %v1032_v59 }
 0x549   : > { %2398 = vmatprep.mubr.msk.f32.mxu1 %vm729_vm0, %v1083_v31  ;;  %v1074_v33 = vmul.f32 %v2271_v10, %v1064_v32 }
 0x54b   : > { %v1084_v34 = vadd.f32 %v2272_v12, %v1074_v33 }
 0x54d   : > { %2399 = vmatmul.mubr.msk.f32.gmra.mrb[4].mxu1 %vm729_vm0, %v1084_v34 }
 0x5c9   : > { %v2397_v37 = vpop.f32.mrb[2].mxu1 }
 0x5ca   : > { %v1180_v38 = vadd.f32 %v2397_v37, %v2273_v5  ;;  %v1174_v39 = vpop.f32.mrb[3].mxu1 }
 0x5cb   : > { %v1175_v40 = vadd.f32 %v2273_v5, %v1174_v39 }
 0x5cc   : > { %v1198_v41 = vmul.f32 0.70710677, %v1180_v38  ;;  %v1194_v47 = vmul.f32 0.5, %v1180_v38 }
 0x5cd   : > { %v1197_v0 = vmul.f32 0.70710677, %v1175_v40  ;;  %v1193_v45 = vmul.f32 0.5, %v1175_v40  ;;  %v2288_v40 = vld [vmem:[%s2856_s16 + $0x4] sm:$0xf]  ;;  %s718_s16 = scalar_lea.vmem %s3148_s13, %s2830_s17 }
 0x5ce   : > { %2559 = verf.f32 %v1198_v41  ;;  %v2292_v41 = vld [vmem:[%s2865_s24 + $0x10] sm:$0xff] }
 0x5cf   : > { %2561 = verf.f32 %v1197_v0  ;;  %v2293_v0 = vld [vmem:[%s2865_s24 + $0x18] sm:$0xff]  ;;  %s3180_s24 = smov 32  }
 0x5d8   : > { %v2560_v43 = vpop.eup %2559 }
 0x5d9   : > { %v2562_v1 = vpop.eup %2561  ;;  %v1206_v44 = vadd.f32 1.0, %v2560_v43 }
 0x5da   : > { %v1205_v46 = vadd.f32 1.0, %v2562_v1 }
 0x5db   : > { %v1210_v49 = vmul.f32 %v1206_v44, %v1194_v47 }
 0x5dc   : > { %v1209_v48 = vmul.f32 %v1205_v46, %v1193_v45 }
 0x5de   : > { %2403 = vmatprep.mubr.msk.f32.mxu0 %vm1221_vm5, %v1209_v48 }
 0x5df   : > { %2404 = vmatmul.mubr.msk.f32.vlgmr.msra.gmra.mrb[2].mxu0 %vm1221_vm5, %v1210_v49 }
 0x620   : > { %v2400_v50 = vpop.f32.mrb[4].mxu1 }
 0x621   : > { %v1190_v52 = vadd.f32 %v2400_v50, %v2273_v5  ;;  %v1184_v53 = vpop.f32.mrb[5].mxu1 }
 0x622   : > { %v1185_v54 = vadd.f32 %v2273_v5, %v1184_v53 }
 0x623   : > { %v1200_v55 = vmul.f32 0.70710677, %v1190_v52  ;;  %v1196_v62 = vmul.f32 0.5, %v1190_v52 }
 0x624   : > { %v1199_v56 = vmul.f32 0.70710677, %v1185_v54  ;;  %v1195_v60 = vmul.f32 0.5, %v1185_v54 }
 0x625   : > { %2563 = verf.f32 %v1200_v55 }
 0x626   : > { %2565 = verf.f32 %v1199_v56  ;;  %v2285_v56 = vld [vmem:[%s2839_s30 + $0x1] ss:$0 sm:$0xff] }
 0x62f   : > { %v2564_v57 = vpop.eup %2563 }
 0x630   : > { %v2566_v58 = vpop.eup %2565  ;;  %v1208_v59 = vadd.f32 1.0, %v2564_v57 }
 0x631   : > { %v1207_v61 = vadd.f32 1.0, %v2566_v58 }
 0x632   : > { %v1212_v3 = vmul.f32 %v1208_v59, %v1196_v62  ;;  %v2286_v59 = vld [vmem:[%s2847_s27 + $0x1] ss:$0 sm:$0xff]  ;;  %s3181_s27 = smov 96  }
 0x633   : > { %v1211_v63 = vmul.f32 %v1207_v61, %v1195_v60 }
 0x635   : > { %2406 = vmatprep.mubr.msk.f32.mxu0 %vm1221_vm5, %v1211_v63 }
 0x636   : > { %2407 = vmatmul.mubr.msk.f32.gmra.mrb[4].mxu0 %vm1221_vm5, %v1212_v3 }
 0x637   : > { %2413 = vmatprep.mubr.msk.f32.mxu0 %vm2658_vm1, %v2659_v51 }
 0x6b2   : > { %v2405_v4 = vpop.f32.mrb[2].mxu0 }
 0x6b3   : > { %v1300_v6 = vpop.f32.mrb[3].mxu0  ;;  %v1306_v9 = vadd.f32 %v2405_v4, %v2278_v7 }
 0x6b4   : > { %v1301_v12 = vadd.f32 %v2278_v7, %v1300_v6 }
 0x6b5   : > { %v2985_v16 = vadd.f32 %v1306_v9, %v2898_v30 }
 0x6b6   : > { %v2990_v18 = vadd.f32 %v1301_v12, %v2895_v29 }
 0x709   : > { %v2408_v8 = vpop.f32.mrb[4].mxu0 }
 0x70a   : > { %v1316_v10 = vadd.f32 %v2408_v8, %v2278_v7  ;;  %v1310_v11 = vpop.f32.mrb[5].mxu0 }
 0x70b   : > { %v1311_v13 = vadd.f32 %v2278_v7, %v1310_v11 }
 0x70c   : > { %v2979_v14 = vadd.f32 %v1316_v10, %v2908_v36  ;;  %v1330_v36 = vsel %vm729_vm0, %v2985_v16, 0.0 }
 0x70d   : > { %v2982_v15 = vadd.f32 %v1311_v13, %v2905_v35  ;;  %v1327_v35 = vsel %vm729_vm0, %v2990_v18, 0.0 }
 0x70e   : > { %v1336_v17 = vsel %vm729_vm0, %v2979_v14, 0.0 }
 0x70f   : > { %1337 = vadd.xlane.f32.xlu1 %v1336_v17  ;;  %v1333_v19 = vsel %vm729_vm0, %v2982_v15, 0.0 }
 0x710   : > { %1334 = vadd.xlane.f32.xlu0 %v1333_v19 }
 0x713   : > { %1331 = vadd.xlane.f32.xlu1 %v1330_v36 }
 0x714   : > { %1328 = vadd.xlane.f32.xlu0 %v1327_v35 }
 0x79c   : > { %v1338_v30 = vpop.xlane.xlu1 %1337 }
 0x79d   : > { %v1342_v20 = vmul.f32 0.03125, %v1338_v30  ;;  %v1335_v21 = vpop.xlane.xlu0 %1334 }
 0x79e   : > { %v1341_v22 = vmul.f32 0.03125, %v1335_v21  ;;  %v2287_v21 = vld [vmem:[%s2875_s26 + $0x4] sm:$0xf]  ;;  %s660_s26 = sand.u32 1, %s2647_s19  }
 0x79f   : > { %v1346_v29 = vsub.f32 %v2979_v14, %v1342_v20  ;;  %s2024_s5 = scalar_lea.sflag [#allocation3], %s660_s26 }
 0x7a0   : > { %v1345_v23 = vsub.f32 %v2982_v15, %v1341_v22  ;;  %v1332_v24 = vpop.xlane.xlu1 %1331  ;;  %v2290_v22 = vld [vmem:[%s2884_s6 + $0x10] sm:$0xff] }
 0x7a1   : > { %v1340_v25 = vmul.f32 0.03125, %v1332_v24  ;;  %v1329_v26 = vpop.xlane.xlu0 %1328  ;;  %v1350_v27 = vmul.f32 %v1346_v29, %v1346_v29 }
 0x7a2   : > { %v1339_v28 = vmul.f32 0.03125, %v1329_v26  ;;  %v1349_v31 = vmul.f32 %v1345_v23, %v1345_v23 }
 0x7a3   : > { %v1344_v32 = vsub.f32 %v2985_v16, %v1340_v25  ;;  %v1360_v33 = vsel %vm729_vm0, %v1350_v27, 0.0 }
 0x7a4   : > { %v1343_v34 = vsub.f32 %v2990_v18, %v1339_v28  ;;  %1361 = vadd.xlane.f32.xlu1 %v1360_v33  ;;  %v1357_v2 = vsel %vm729_vm0, %v1349_v31, 0.0  ;;  %v2291_v33 = vld [vmem:[%s2884_s6 + $0x18] sm:$0xff] }
 0x7a5   : > { %1358 = vadd.xlane.f32.xlu0 %v1357_v2  ;;  %v1348_v5 = vmul.f32 %v1344_v32, %v1344_v32 }
 0x7a6   : > { %v1347_v37 = vmul.f32 %v1343_v34, %v1343_v34 }
 0x7a7   : > { %v1354_v38 = vsel %vm729_vm0, %v1348_v5, 0.0 }
 0x7a8   : > { %1355 = vadd.xlane.f32.xlu1 %v1354_v38  ;;  %v1351_v39 = vsel %vm729_vm0, %v1347_v37, 0.0 }
 0x7a9   : > { %1352 = vadd.xlane.f32.xlu0 %v1351_v39 }
 0x7b9   : > { %1415 = vperm.xlu1 %2534, %v2288_v40  }
 0x7bd   : > { %1504 = vperm.xlu1 %2534, %v2292_v41  }
 0x7c1   : > { %1509 = vperm.xlu1 %2534, %v2293_v0  }
 0x831   : > { %v1362_v43 = vpop.xlane.xlu1 %1361 }
 0x832   : > { %v1366_v1 = vmul.f32 0.03125, %v1362_v43  ;;  %v1359_v44 = vpop.xlane.xlu0 %1358 }
 0x833   : > { %v1365_v45 = vmul.f32 0.03125, %v1359_v44 }
 0x834   : > { %v1370_v46 = vadd.f32 1e-05, %v1366_v1 }
 0x835   : > { %v1369_v47 = vadd.f32 1e-05, %v1365_v45  ;;  %v1356_v48 = vpop.xlane.xlu1 %1355 }
 0x836   : > { %2567 = vrsqrt.f32 %v1370_v46  ;;  %v1364_v49 = vmul.f32 0.03125, %v1356_v48  ;;  %v1353_v50 = vpop.xlane.xlu0 %1352 }
 0x837   : > { %2569 = vrsqrt.f32 %v1369_v47  ;;  %v1363_v52 = vmul.f32 0.03125, %v1353_v50 }
 0x838   : > { %v1368_v53 = vadd.f32 1e-05, %v1364_v49 }
 0x839   : > { %v1367_v54 = vadd.f32 1e-05, %v1363_v52 }
 0x83a   : > { %2571 = vrsqrt.f32 %v1368_v53 }
 0x83b   : > { %2573 = vrsqrt.f32 %v1367_v54 }
 0x840   : > { %v2568_v55 = vpop.eup %2567 }
 0x841   : > { %v2570_v57 = vpop.eup %2569  ;;  %v1378_v58 = vmul.f32 %v2568_v55, %v1346_v29  ;;  %v1416_v29 = vpop.permute.xlu1 %1415 }
 0x842   : > { %v1377_v60 = vmul.f32 %v2570_v57, %v1345_v23  ;;  %v2302_v57 = vld [vmem:[%s2922_s2 + $0x28] sm:$0xff] }
 0x843   : > { %v1388_v61 = vmul.f32 %v2285_v56, %v1378_v58 }
 0x844   : > { %v2572_v62 = vpop.eup %2571  ;;  %v1387_v63 = vmul.f32 %v2285_v56, %v1377_v60  ;;  %v2304_v60 = vld [vmem:[%s2922_s2 + $0x38] sm:$0xff] }
 0x845   : > { %v2574_v3 = vpop.eup %2573  ;;  %v1376_v4 = vmul.f32 %v2572_v62, %v1344_v32  ;;  %v1398_v6 = vadd.f32 %v2286_v59, %v1388_v61 }
 0x846   : > { %v1375_v7 = vmul.f32 %v2574_v3, %v1343_v34  ;;  %v1397_v8 = vadd.f32 %v2286_v59, %v1387_v63  ;;  %v1505_v34 = vpop.permute.xlu1 %1504 }
 0x847   : > { %v1386_v9 = vmul.f32 %v2285_v56, %v1376_v4 }
 0x848   : > { %v2535_v10 = vpack.i.bf16 %v1398_v6, %v1397_v8  ;;  %v1385_v11 = vmul.f32 %v2285_v56, %v1375_v7  ;;  %v2301_v56 = vld [vmem:[%s2922_s2 + $0x20] sm:$0xff] }
 0x849   : > { %v1396_v12 = vadd.f32 %v2286_v59, %v1386_v9  ;;  %v2468_v58 = vpack.c.bf16 %v2302_v57, %v2301_v56 }
 0x84a   : > { %2536 = vrot.lane.b32.xlu0 %v2535_v10, %s3180_s24  ;;  %v1395_v13 = vadd.f32 %v2286_v59, %v1385_v11  ;;  %v1510_v2 = vpop.permute.xlu1 %1509  ;;  %v2303_v59 = vld [vmem:[%s2922_s2 + $0x30] sm:$0xff]  ;;  %s2323_s2 = sshll.u32 %s2765_s22, 4  ;;  %s2663_s22 = smov [#allocation2]  }
 0x84b   : > { %v2472_v61 = vpack.c.bf16 %v2304_v60, %v2303_v59 }
 0x8bc   : > { %v2537_v17 = vpop.permute.xlu0 %2536 }
 0x8bd   : > { %v2539_v19 = vunpack.i.h.bf16 %v2537_v17  ;;  %v2538_v36 = vunpack.i.l.bf16 %v2537_v17 }
 0x8bf   : > { %v1408_v35 = vsel %vm729_vm0, %v1396_v12, %v2539_v19  ;;  %v1407_v30 = vsel %vm729_vm0, %v1395_v13, %v2538_v36 }
 0x8c0   : > { %v2466_v20 = vpack.c.bf16 %v1408_v35, %v1407_v30 }
 0x8c2   : > { %2467 = vmatpush3.bf16.msra.mxu0 %v2466_v20  ;;  %v2299_v20 = vld [vmem:[%s2936_s25 + $0x1] ss:$0 sm:$0xff]  ;;  %s661_s25 = scalar_lea.vmem [#allocation2], %s660_s26 }
 0x8c3   : > { %s2036_s20 = sshll.u32 %s661_s25, 4  ;;  %s3095_s20 = int_to_ptr.vmem [resolvable:$true] %s2036_s20 }
 0x8c4   : > { %s2593_s7 = scalar_lea.vmem %s3095_s20, 16 }
 0x8c5   : > { %2414 = vmatmul.mubr.msk.f32.vlgmr.msra.gmra.mrb[6].mxu0 %vm820_vm2, %v2287_v21  ;;  %p2594_p11 = scmp.ne.s32.totalorder %s3095_s20, %s2593_s7 }
 0x8c6   : > { %2418 = vmatprep.mubr.msk.f32.mxu0 %vm913_vm3, %v2290_v22  ;;  %v2300_v22 = vld [vmem:[%s2942_s3 + $0x1] ss:$0 sm:$0xff] }
 0x8c7   : > { %p2595_p12 = pnand %p2594_p11, %p2782_p5 }
 0x8c9   : > { %p2596_p13 = pneg %p2595_p12 }
 0x998   : > { %v1487_v23 = vpop.f32.mrb[6].mxu0 }
 0x999   : > { %v1488_v24 = vadd.f32 %v1487_v23, %v1416_v29  ;;  %v2415_v25 = vpop.f32.mrb[7].mxu0 }
 0x99b   : > { %v1492_v26 = vmul.f32 0.70710677, %v1488_v24  ;;  %v1491_v28 = vmul.f32 0.5, %v1488_v24 }
 0x99d   : > { %2575 = verf.f32 %v1492_v26 }
 0x9a7   : > { %v2576_v27 = vpop.eup %2575 }
 0x9a8   : > { %v1494_v31 = vadd.f32 1.0, %v2576_v27 }
 0x9aa   : > { %v1495_v32 = vmul.f32 %v1494_v31, %v1491_v28 }
 0x9ac   : > { %2416 = vmatprep.subr.msk.mxu0 %vm920_vm4, %v1495_v32 }
 0x9ad   : > { %2417 = vmatpush3.msk.msra.mxu0 %vm920_vm4, %v1495_v32 }
 0x9ae   : > { %2419 = vmatmul.mubr.msk.f32.vlgmr.msra.gmra.mrb[8].mxu0 %vm913_vm3, %v2291_v33  ;;  %2469 = vmatprep.subr.bf16.mxu0 %v2468_v58 }
 0x9af   : > { %2471 = vmatpush3.bf16.msra.mxu0 %v2468_v58 }
 0x9b0   : > { %2473 = vmatprep.subr.bf16.mxu0 %v2472_v61 }
 0x9b3   : > { %2475 = vmatpush3.bf16.msra.mxu0 %v2472_v61 }
 0xa81   : > { %v2420_v5 = vpop.f32.mrb[8].mxu0 }
 0xa82   : > { %v1593_v37 = vadd.f32 %v2420_v5, %v1510_v2  ;;  %v1587_v38 = vpop.f32.mrb[9].mxu0 }
 0xa83   : > { %v1588_v39 = vadd.f32 %v1587_v38, %v1505_v34 }
 0xa84   : > { %1600 = vrot.lane.b32.xlu1 %v1593_v37, %s3181_s27  ;;  %v3028_v41 = vadd.f32 %v1593_v37, %v2985_v16 }
 0xa85   : > { %1598 = vrot.lane.b32.xlu0 %v1588_v39, %s3181_s27  ;;  %v3025_v40 = vadd.f32 %v1588_v39, %v2990_v18 }
 0xa86   : > { %v1615_v43 = vsel %vm729_vm0, %v3028_v41, 0.0 }
 0xa87   : > { %v1612_v0 = vsel %vm729_vm0, %v3025_v40, 0.0 }
 0xaa4   : > { %1613 = vadd.xlane.f32.xlu0 %v1612_v0 }
 0xaa8   : > { %1616 = vadd.xlane.f32.xlu1 %v1615_v43 }
 0xaf6   : > { %v1601_v1 = vpop.permute.xlu1 %1600 }
 0xaf7   : > { %v1599_v44 = vpop.permute.xlu0 %1598  ;;  %v3038_v46 = vadd.f32 %v1601_v1, %v2979_v14 }
 0xaf8   : > { %v3035_v45 = vadd.f32 %v1599_v44, %v2982_v15 }
 0xaf9   : > { %v1621_v18 = vsel %vm729_vm0, %v3038_v46, 0.0 }
 0xafa   : > { %v1618_v16 = vsel %vm729_vm0, %v3035_v45, 0.0 }
 0xafb   : > { %1619 = vadd.xlane.f32.xlu0 %v1618_v16  ;;  %v2311_v16 = vld [vmem:[%s2954_s0 + $0x8] sm:$0xff] }
 0xafc   : > { %2435 = vmatprep.subr.mxu1 %v2311_v16 }
 0xafd   : > { %2436 = vmatpush3.msra.mxu1 %v2311_v16 }
 0xafe   : > { %2476 = vmatprep.subr.bf16.mxu1 %v2657_v42 }
 0xaff   : > { %1622 = vadd.xlane.f32.xlu0 %v1621_v18  ;;  %v2306_v18 = vld [vmem:[%s2962_s8 + $0x1] ss:$0 sm:$0xff]  ;;  %s721_s8 = scalar_lea.vmem %s3149_s14, %s2830_s17  ;;  %s3093_s17 = scalar_lea.hbm %s3150_s15, %s2323_s2 }
 0xb31   : > { %v1614_v47 = vpop.xlane.xlu0 %1613 }
 0xb32   : > { %v1624_v48 = vmul.f32 0.03125, %v1614_v47 }
 0xb34   : > { %v1628_v49 = vsub.f32 %v3025_v40, %v1624_v48 }
 0xb35   : > { %v1617_v15 = vpop.xlane.xlu1 %1616 }
 0xb36   : > { %v1625_v50 = vmul.f32 0.03125, %v1617_v15  ;;  %v1632_v14 = vmul.f32 %v1628_v49, %v1628_v49 }
 0xb38   : > { %v1629_v52 = vsub.f32 %v3028_v41, %v1625_v50  ;;  %v1636_v53 = vsel %vm729_vm0, %v1632_v14, 0.0 }
 0xb39   : > { %1637 = vadd.xlane.f32.xlu0 %v1636_v53 }
 0xb3a   : > { %v1633_v54 = vmul.f32 %v1629_v52, %v1629_v52 }
 0xb3c   : > { %v1639_v55 = vsel %vm729_vm0, %v1633_v54, 0.0 }
 0xb3d   : > { %1640 = vadd.xlane.f32.xlu1 %v1639_v55 }
 0xb88   : > { %v1620_v62 = vpop.xlane.xlu0 %1619 }
 0xb89   : > { %v1626_v63 = vmul.f32 0.03125, %v1620_v62 }
 0xb8b   : > { %v1630_v3 = vsub.f32 %v3035_v45, %v1626_v63 }
 0xb8c   : > { %v1623_v4 = vpop.xlane.xlu0 %1622 }
 0xb8d   : > { %v1627_v6 = vmul.f32 0.03125, %v1623_v4  ;;  %v1634_v7 = vmul.f32 %v1630_v3, %v1630_v3 }
 0xb8f   : > { %v1631_v8 = vsub.f32 %v3038_v46, %v1627_v6  ;;  %v1642_v9 = vsel %vm729_vm0, %v1634_v7, 0.0 }
 0xb90   : > { %1643 = vadd.xlane.f32.xlu0 %v1642_v9 }
 0xb91   : > { %v1635_v10 = vmul.f32 %v1631_v8, %v1631_v8 }
 0xb93   : > { %v1645_v11 = vsel %vm729_vm0, %v1635_v10, 0.0 }
 0xb94   : > { %1646 = vadd.xlane.f32.xlu1 %v1645_v11 }
 0xbc6   : > { %v1638_v12 = vpop.xlane.xlu0 %1637 }
 0xbc7   : > { %v1648_v13 = vmul.f32 0.03125, %v1638_v12 }
 0xbc9   : > { %v1652_v17 = vadd.f32 1e-05, %v1648_v13 }
 0xbca   : > { %v1641_v19 = vpop.xlane.xlu1 %1640 }
 0xbcb   : > { %2577 = vrsqrt.f32 %v1652_v17  ;;  %v1649_v36 = vmul.f32 0.03125, %v1641_v19  ;;  %v1926_v17 = vld [vmem:[%s721_s8] sm:$0x1]  ;;  %v2313_v19 = vld [vmem:[%s2975_s1 + $0x1] ss:$0 sm:$0xff]  ;;  %s2597_s1 = sshll.u32 %s2663_s22, 4  ;;  %s2598_s1 = int_to_ptr.vmem [resolvable:$false] %s2597_s1 }
 0xbcc   : > { %1929 = vperm.xlu0 %2540, %v1926_v17   ;;  %s2599_s24 = scalar_lea.vmem %s2598_s1, 32  ;;  %p2600_p0 = scmp.lt.s32.totalorder %s3095_s20, %s2598_s1 }
 0xbcd   : > { %v1653_v35 = vadd.f32 1e-05, %v1649_v36  ;;  %p2601_p1 = scmp.lt.s32.totalorder %s2599_s24, %s2593_s7 }
 0xbcf   : > { %2579 = vrsqrt.f32 %v1653_v35  ;;  %p2602_p2 = por %p2601_p1, %p2600_p0 }
 0xbd1   : > { %p2603_p3 = pnand %p2602_p2, %p2596_p13 }
 0xbd5   : > { %v2578_v30 = vpop.eup %2577 }
 0xbd6   : > { %v1660_v21 = vmul.f32 %v2578_v30, %v1628_v49 }
 0xbd8   : > { %v1670_v29 = vmul.f32 %v2299_v20, %v1660_v21 }
 0xbd9   : > { %v2580_v23 = vpop.eup %2579 }
 0xbda   : > { %v1661_v24 = vmul.f32 %v2580_v23, %v1629_v52  ;;  %v1680_v25 = vadd.f32 %v2300_v22, %v1670_v29 }
 0xbdc   : > { %2429 = vmatprep.mubr.msk.f32.mxu0 %vm729_vm0, %v1680_v25  ;;  %v1671_v26 = vmul.f32 %v2299_v20, %v1661_v24 }
 0xbde   : > { %v1681_v27 = vadd.f32 %v2300_v22, %v1671_v26 }
 0xbe0   : > { %2430 = vmatmul.mubr.msk.f32.vlgmr.msra.gmra.mrb[10].mxu0 %vm729_vm0, %v1681_v27 }
 0xc1d   : > { %v1644_v28 = vpop.xlane.xlu0 %1643 }
 0xc1e   : > { %v1650_v31 = vmul.f32 0.03125, %v1644_v28  ;;  %v1932_v28 = vlaneseq }
 0xc20   : > { %v1654_v32 = vadd.f32 1e-05, %v1650_v31 }
 0xc21   : > { %v1647_v33 = vpop.xlane.xlu1 %1646 }
 0xc22   : > { %2581 = vrsqrt.f32 %v1654_v32  ;;  %v1651_v34 = vmul.f32 0.03125, %v1647_v33 }
 0xc24   : > { %v1655_v2 = vadd.f32 1e-05, %v1651_v34 }
 0xc26   : > { %2583 = vrsqrt.f32 %v1655_v2 }
 0xc2c   : > { %v2582_v5 = vpop.eup %2581 }
 0xc2d   : > { %v1662_v37 = vmul.f32 %v2582_v5, %v1630_v3 }
 0xc2f   : > { %v1672_v38 = vmul.f32 %v2299_v20, %v1662_v37 }
 0xc30   : > { %v2584_v39 = vpop.eup %2583 }
 0xc31   : > { %v1682_v0 = vadd.f32 %v2300_v22, %v1672_v38  ;;  %v1663_v43 = vmul.f32 %v2584_v39, %v1631_v8 }
 0xc33   : > { %2432 = vmatprep.mubr.msk.f32.mxu0 %vm729_vm0, %v1682_v0  ;;  %v1673_v1 = vmul.f32 %v2299_v20, %v1663_v43 }
 0xc35   : > { %v1683_v44 = vadd.f32 %v2300_v22, %v1673_v1 }
 0xc37   : > { %2433 = vmatmul.mubr.msk.f32.gmra.mrb[12].mxu0 %vm729_vm0, %v1683_v44 }
 0xc4b   : > { %v1930_v32 = vpop.permute.xlu0 %1929 }
 0xcb3   : > { %v2431_v47 = vpop.f32.mrb[10].mxu0 }
 0xcb4   : > { %v1781_v48 = vadd.f32 %v2431_v47, %v2306_v18  ;;  %v1775_v49 = vpop.f32.mrb[11].mxu0 }
 0xcb5   : > { %v1776_v15 = vadd.f32 %v2306_v18, %v1775_v49 }
 0xcb6   : > { %v1799_v50 = vmul.f32 0.70710677, %v1781_v48  ;;  %v1795_v57 = vmul.f32 0.5, %v1781_v48 }
 0xcb7   : > { %v1798_v14 = vmul.f32 0.70710677, %v1776_v15  ;;  %v1794_v55 = vmul.f32 0.5, %v1776_v15 }
 0xcb8   : > { %2585 = verf.f32 %v1799_v50 }
 0xcb9   : > { %2587 = verf.f32 %v1798_v14 }
 0xcc2   : > { %v2586_v52 = vpop.eup %2585 }
 0xcc3   : > { %v2588_v53 = vpop.eup %2587  ;;  %v1807_v54 = vadd.f32 1.0, %v2586_v52 }
 0xcc4   : > { %v1806_v56 = vadd.f32 1.0, %v2588_v53 }
 0xcc5   : > { %v1811_v59 = vmul.f32 %v1807_v54, %v1795_v57 }
 0xcc6   : > { %v1810_v58 = vmul.f32 %v1806_v56, %v1794_v55 }
 0xcc8   : > { %2437 = vmatprep.mubr.msk.f32.mxu1 %vm1221_vm5, %v1810_v58 }
 0xcc9   : > { %2438 = vmatmul.mubr.msk.f32.vlgmr.msra.gmra.mrb[6].mxu1 %vm1221_vm5, %v1811_v59 }
 0xd0a   : > { %v2434_v60 = vpop.f32.mrb[12].mxu0 }
 0xd0b   : > { %v1791_v61 = vadd.f32 %v2434_v60, %v2306_v18  ;;  %v1785_v62 = vpop.f32.mrb[13].mxu0 }
 0xd0c   : > { %v1786_v63 = vadd.f32 %v2306_v18, %v1785_v62 }
 0xd0d   : > { %v1801_v3 = vmul.f32 0.70710677, %v1791_v61  ;;  %v1797_v11 = vmul.f32 0.5, %v1791_v61 }
 0xd0e   : > { %v1800_v4 = vmul.f32 0.70710677, %v1786_v63  ;;  %v1796_v9 = vmul.f32 0.5, %v1786_v63 }
 0xd0f   : > { %2589 = verf.f32 %v1801_v3 }
 0xd10   : > { %2591 = verf.f32 %v1800_v4 }
 0xd19   : > { %v2590_v6 = vpop.eup %2589 }
 0xd1a   : > { %v2592_v7 = vpop.eup %2591  ;;  %v1809_v8 = vadd.f32 1.0, %v2590_v6 }
 0xd1b   : > { %v1808_v10 = vadd.f32 1.0, %v2592_v7 }
 0xd1c   : > { %v1813_v13 = vmul.f32 %v1809_v8, %v1797_v11 }
 0xd1d   : > { %v1812_v12 = vmul.f32 %v1808_v10, %v1796_v9 }
 0xd1f   : > { %2440 = vmatprep.mubr.msk.f32.mxu1 %vm1221_vm5, %v1812_v12 }
 0xd20   : > { %2441 = vmatmul.mubr.msk.f32.gmra.mrb[8].mxu1 %vm1221_vm5, %v1813_v13 }
 0xd21   : > { %2451 = vmatprep.mubr.msk.f32.mxu1 %vm2658_vm1, %v2659_v51 }
 0xd9c   : > { %v2439_v36 = vpop.f32.mrb[6].mxu1 }
 0xd9d   : > { %v1908_v35 = vadd.f32 %v2439_v36, %v2313_v19  ;;  %v1902_v30 = vpop.f32.mrb[7].mxu1 }
 0xd9e   : > { %v1903_v20 = vadd.f32 %v2313_v19, %v1902_v30 }
 0xd9f   : > { %v1922_v21 = vadd.f32 %v1908_v35, %v3028_v41 }
 0xda0   : > { %v1921_v22 = vadd.f32 %v1903_v20, %v3025_v40  ;;  %v1925_v40 = vld [vmem:[%s718_s16] sm:$0x1] }
 0xda2   : > { %v2477_v51 = vpack.c.bf16 %v1922_v21, %v1921_v22 }
 0xda4   : > { %2479 = vmatpush3.bf16.xpose.msk.msra.mxu1 %vm2478_vm6, %v2477_v51 }
 0xda5   : > { %2480 = vmatprep.subr.bf16.mxu1 %v2657_v42  ;;  %v1933_v42 = vshrl.u32 %v1932_v28, 7 }
 0xda7   : > { %v1934_v31 = vsub.s32 0, %v1933_v42 }
 0xda9   : > { %v1935_v33 = vrot.slane %v1930_v32, %v1934_v31 }
 0xdf3   : > { %v2442_v29 = vpop.f32.mrb[8].mxu1 }
 0xdf4   : > { %v1918_v23 = vadd.f32 %v2442_v29, %v2313_v19  ;;  %v1912_v24 = vpop.f32.mrb[9].mxu1 }
 0xdf5   : > { %v1913_v25 = vadd.f32 %v2313_v19, %v1912_v24 }
 0xdf6   : > { %v1924_v26 = vadd.f32 %v1918_v23, %v3038_v46 }
 0xdf7   : > { %v1923_v27 = vadd.f32 %v1913_v25, %v3035_v45 }
 0xdf9   : > { %v2481_v41 = vpack.c.bf16 %v1924_v26, %v1923_v27 }
 0xdfb   : > { %2483 = vmatpush3.bf16.xpose.msk.msra.mxu1 %vm2478_vm6, %v2481_v41 }
 0xe02   : > { %2452 = vmatmul.mubr.msk.f32.vlgmr.msra.gmra.mrb[10].mxu1 %vm729_vm0, %v1925_v40 }
 0xed5   : > { %v2017_v45 = vpop.f32.mrb[10].mxu1 }
 0xed6   : > { %v2018_v46 = vadd.f32 %v2017_v45, %v1935_v33  ;;  %v2453_v34 = vpop.f32.mrb[11].mxu1 }
 0xed8   : > { %2022 = vst.msk [vmem:[%s661_s25] sm:$0x1] %vm2021_vm7, %v2018_v46 }
 0xed9   : > { %2606 = shalt.err (!%p2603_p3)
}
 0xeda   : > { %s2607_s27 = scalar_lea.hbm %s3093_s17, 16  ;;  %s2611_s8 = scalar_lea.hbm %s3150_s15, 32 }
 0xedb   : > { %p2608_p4 = scmp.ne.s32.totalorder %s3093_s17, %s2607_s27  ;;  %p2612_p9 = scmp.lt.u32.totalorder %s3093_s17, %s3150_s15 }
 0xedc   : > { %p2613_p10 = scmp.lt.u32.totalorder %s2611_s8, %s2607_s27  ;;  %p2615_p12 = scmp.lt.u32.totalorder %s2607_s27, %s3093_s17 }
 0xedd   : > { %p2609_p7 = pnand %p2608_p4, %p2782_p5 }
 0xede   : > { %p2614_p11 = por %p2613_p10, %p2612_p9 }
 0xedf   : > { %p2610_p8 = pneg %p2609_p7 }
 0xee0   : > { %p2616_p13 = por %p2615_p12, %p2614_p11 }
 0xee2   : > { %p2617_p0 = pnand %p2616_p13, %p2610_p8 }
 0xee4   : > { %2620 = shalt.err (!%p2617_p0)
}
 0xee5   : > { %2484 = dma.vmem_to_hbm [thread:$0]  (%p2782_p5), %s3095_s20, 16, %s3093_s17, %s2024_s5  }
 0xee6 PF: > { %p2490_p1 = scmp.ge.s32.totalorder %s2655_s21, 2  ;;  %s2048_s16 = sand.u32 1, %s2643_s18  }
 0xee7   : > { %s2049_s26 = scalar_lea.sflag [#allocation3], %s2048_s16 }
 0xee8   : > { %p2487_p2 = pnand %p2490_p1, %p2786_p6 }
 0xeea   : > { %2638 = dma.done.wait (!%p2487_p2), %s2049_s26, 16  }
 0xeeb   : > { %2640 = vsyncadd (!%p2487_p2), %s2049_s26, 4294967280  ;;  %s3182_s21 = sld [smem:[#allocation6_spill]]  ;;  %s3183_s2 = sld [smem:[#allocation5_spill]] }
 0xeec   : > { %s3184_s20 = sld [smem:[#allocation7_spill]]  ;;  %s3185_s18 = smov %s2647_s19 }
 0xef1   : > { %p25_p3 = scmp.ge.s32.totalorder %s3182_s21, 4   ;;  %s3186_s19 = smov %s3183_s2 }
 0xef3   :  { %27 = sbr.rel (!%p25_p3) target bundleno = 13 (0xd), region = 167 }
 0xefa   :  { %2053 = vsyncpa [#allocation3], 1 }
 0xefb   :  { %2055 = vsyncpa [#allocation3 + $0x1], 1 }

</bundles_post_ra>
